<compile_context>
chip_gen: v5e
topology: v5e:2x2
jax: 0.10.0
libtpu: 0.0.40
codegen_flags: <defaults>
</compile_context>

<pallas_src>
import functools

import jax
import jax.numpy as jnp
import numpy as np
from jax.experimental import pallas as pl
from jax.experimental.pallas import tpu as pltpu

EPS = 1e-5
PAD = 128  # flat halo padding (>= H*W + W + 1 for the shapes used), lane-aligned


# ---------------- fused Pallas kernel ----------------

def _make_fused_kernel(D, H, W):
    M = D * H * W

    def kernel(x_ref, w1_ref, w2_ref, w3_ref, b1_ref, b2_ref, b3_ref, mask_ref,
               o_ref, hpad_ref, col_ref):
        Cmid = w1_ref.shape[0]
        x = x_ref[0]                                              # (Cin, M) f32, residual path

        # --- conv1 (1x1x1) + bn1 (scale folded into w1) + relu ---
        h = jnp.dot(w1_ref[...], x.astype(jnp.bfloat16),
                    preferred_element_type=jnp.float32)           # (Cmid, M)
        h = jnp.maximum(h + b1_ref[...], 0.0)

        # --- build flat-padded copy of h (halo handled in VMEM, no HBM pad) ---
        hpad_ref[...] = jnp.zeros(hpad_ref.shape, hpad_ref.dtype)
        hpad_ref[:, PAD:PAD + M] = h

        # --- im2col: col[t*Cmid:(t+1)*Cmid, m] = h[:, shifted(m, tap t)] (0 at D/H/W borders) ---
        for kd in range(3):
            for kh in range(3):
                for kw in range(3):
                    t = kd * 9 + kh * 3 + kw
                    off = (kd - 1) * H * W + (kh - 1) * W + (kw - 1)
                    sh = hpad_ref[:, PAD + off:PAD + off + M]     # (Cmid, M) lane-shifted view
                    col_ref[t * Cmid:(t + 1) * Cmid, :] = sh * mask_ref[t:t + 1, :]

        # --- conv2 (grouped 3x3x3 embedded block-diagonally) + bn2 + relu: ONE K=27*Cmid matmul ---
        h2 = jnp.dot(w2_ref[...], col_ref[...].astype(jnp.bfloat16),
                     preferred_element_type=jnp.float32)          # (Cmid, M)
        h2 = jnp.maximum(h2 + b2_ref[...], 0.0)

        # --- conv3 (1x1x1) + bn3 + identity residual + relu ---
        out = jnp.dot(w3_ref[...], h2.astype(jnp.bfloat16),
                      preferred_element_type=jnp.float32)         # (Cout, M)
        o_ref[0] = jnp.maximum(out + b3_ref[...] + x, 0.0)

    return kernel


def resnext_block_c_forward(x_ncdhw, params):
    """stride=1, bypass=None => identity residual (requires in_chans == 2*mid_chans)."""
    N, Cin, D, H, W = x_ncdhw.shape
    M = D * H * W
    Cmid = params["w1s"].shape[0]
    Cout = params["w3s"].shape[0]
    assert Cin == Cout, "identity residual requires in_chans == out_chans"
    # TODO(synk): general shapes need M padding to a multiple of 128 and channel padding to 8.
    assert M % 128 == 0 and Cin % 8 == 0 and Cmid % 8 == 0

    x3 = x_ncdhw.reshape(N, Cin, M)        # free reshape, stays NC(DHW) channels-first
    kernel = _make_fused_kernel(D, H, W)

    out3 = pl.pallas_call(
        kernel,
        out_shape=jax.ShapeDtypeStruct((N, Cout, M), jnp.float32),
        grid=(N,),
        in_specs=[
            pl.BlockSpec((1, Cin, M), lambda n: (n, 0, 0)),          # x (per-batch block)
            pl.BlockSpec((Cmid, Cin), lambda n: (0, 0)),             # w1 (bf16, scale-folded)
            pl.BlockSpec((Cmid, 27 * Cmid), lambda n: (0, 0)),       # w2 dense big-K (bf16)
            pl.BlockSpec((Cout, Cmid), lambda n: (0, 0)),            # w3 (bf16)
            pl.BlockSpec((Cmid, 1), lambda n: (0, 0)),               # bn1 bias
            pl.BlockSpec((Cmid, 1), lambda n: (0, 0)),               # bn2 bias
            pl.BlockSpec((Cout, 1), lambda n: (0, 0)),               # bn3 bias
            pl.BlockSpec((27, M), lambda n: (0, 0)),                 # boundary masks
        ],
        out_specs=pl.BlockSpec((1, Cout, M), lambda n: (n, 0, 0)),
        scratch_shapes=[
            pltpu.VMEM((Cmid, M + 2 * PAD), jnp.float32),            # flat-padded h
            pltpu.VMEM((27 * Cmid, M), jnp.float32),                 # im2col buffer
        ],
        compiler_params=pltpu.CompilerParams(dimension_semantics=("parallel",)),
    )(x3, params["w1s"], params["w2s"], params["w3s"],
      params["b1"], params["b2"], params["b3"], params["masks"])

    return out3.reshape(N, Cout, D, H, W)   # free reshape back to NCDHW


# ---------------- parameter / constant setup glue ----------------

def fold_bn(gamma, beta, mean, var, eps=EPS):
    scale = gamma / jnp.sqrt(var + eps)
    bias = beta - mean * scale
    return scale, bias


def grouped_weight_to_big(w2, groups):
    """(Cmid, Cin_per_group, 3, 3, 3) PyTorch grouped layout -> dense (Cmid, 27*Cmid),
    block-diagonal per tap, column order = tap-major / input-channel-minor (matches im2col)."""
    Cmid, cpg = w2.shape[0], w2.shape[1]
    opg = Cmid // groups
    big = jnp.zeros((Cmid, 27, Cmid), jnp.float32)
    for g in range(groups):
        blk = w2[g * opg:(g + 1) * opg].reshape(opg, cpg, 27)   # (opg, cpg, 27) taps row-major
        blk = jnp.transpose(blk, (0, 2, 1))                     # (opg, 27, cpg)
        big = big.at[g * opg:(g + 1) * opg, :, g * cpg:(g + 1) * cpg].set(blk)
    return big.reshape(Cmid, 27 * Cmid)


def make_tap_masks(D, H, W):
    """(27, D*H*W) f32 validity masks for each 3x3x3 tap (zero outside the padded volume)."""
    M = D * H * W
    idx = np.arange(M)
    d = idx // (H * W)
    h = (idx // W) % H
    w = idx % W
    masks = np.zeros((27, M), np.float32)
    t = 0
    for kd in range(3):
        for kh in range(3):
            for kw in range(3):
                ok = ((d + kd - 1 >= 0) & (d + kd - 1 < D) &
                      (h + kh - 1 >= 0) & (h + kh - 1 < H) &
                      (w + kw - 1 >= 0) & (w + kw - 1 < W))
                masks[t] = ok.astype(np.float32)
                t += 1
    return jnp.asarray(masks)


# ---------------- pure-JAX reference (mirrors PyTorch forward, eval-mode BN) ----------------

def reference_forward(x, w1, w2, w3, bn1, bn2, bn3, groups, eps=EPS):
    dn = ("NCDHW", "OIDHW", "NCDHW")

    def bn(y, p):
        g, b, m, v = p
        sh = (1, -1, 1, 1, 1)
        return (y - m.reshape(sh)) / jnp.sqrt(v.reshape(sh) + eps) * g.reshape(sh) + b.reshape(sh)

    out = jax.lax.conv_general_dilated(x, w1, (1, 1, 1), "VALID", dimension_numbers=dn)
    out = jax.nn.relu(bn(out, bn1))
    out = jax.lax.conv_general_dilated(out, w2, (1, 1, 1), ((1, 1), (1, 1), (1, 1)),
                                       feature_group_count=groups, dimension_numbers=dn)
    out = jax.nn.relu(bn(out, bn2))
    out = jax.lax.conv_general_dilated(out, w3, (1, 1, 1), "VALID", dimension_numbers=dn)
    out = bn(out, bn3) + x
    return jax.nn.relu(out)


# ---------------- main ----------------

if __name__ == "__main__":
    key = jax.random.PRNGKey(0)
    N, D, H, W = 2, 8, 8, 8
    mid_chans, cardinality = 8, 4
    out_chans = mid_chans * 2            # chans_multiplier = 2
    in_chans = out_chans                 # identity residual path (bypass=None, stride=1)

    ks = jax.random.split(key, 16)
    x = jax.random.normal(ks[0], (N, in_chans, D, H, W), jnp.float32)

    # conv weights, PyTorch layouts (bias=False)
    w1 = 0.1 * jax.random.normal(ks[1], (mid_chans, in_chans, 1, 1, 1), jnp.float32)
    w2 = 0.1 * jax.random.normal(ks[2], (mid_chans, mid_chans // cardinality, 3, 3, 3), jnp.float32)
    w3 = 0.1 * jax.random.normal(ks[3], (out_chans, mid_chans, 1, 1, 1), jnp.float32)

    def bn_params(k, c):
        k1, k2, k3, k4 = jax.random.split(k, 4)
        gamma = 1.0 + 0.1 * jax.random.normal(k1, (c,), jnp.float32)
        beta = 0.1 * jax.random.normal(k2, (c,), jnp.float32)
        mean = 0.1 * jax.random.normal(k3, (c,), jnp.float32)
        var = jnp.abs(jax.random.normal(k4, (c,), jnp.float32)) + 0.5
        return gamma, beta, mean, var

    bn1 = bn_params(ks[4], mid_chans)
    bn2 = bn_params(ks[5], mid_chans)
    bn3 = bn_params(ks[6], out_chans)

    s1, b1 = fold_bn(*bn1)
    s2, b2 = fold_bn(*bn2)
    s3, b3 = fold_bn(*bn3)

    params = {
        # BN scales folded into weights (per output channel), weights cast to bf16 for the MXU
        "w1s": (w1.reshape(mid_chans, in_chans) * s1[:, None]).astype(jnp.bfloat16),
        "w2s": (grouped_weight_to_big(w2, cardinality) * s2[:, None]).astype(jnp.bfloat16),
        "w3s": (w3.reshape(out_chans, mid_chans) * s3[:, None]).astype(jnp.bfloat16),
        "b1": b1.reshape(-1, 1).astype(jnp.float32),
        "b2": b2.reshape(-1, 1).astype(jnp.float32),
        "b3": b3.reshape(-1, 1).astype(jnp.float32),
        "masks": make_tap_masks(D, H, W),
    }

    out = jax.jit(resnext_block_c_forward)(x, params)
    out = jax.block_until_ready(out)

    ref = reference_forward(x, w1, w2, w3, bn1, bn2, bn3, cardinality)
    ref = jax.block_until_ready(ref)

    # bf16 MXU operands with f32 accumulation -> bf16-appropriate tolerance
    np.testing.assert_allclose(np.asarray(out), np.asarray(ref), rtol=2e-2, atol=2e-2)
    print("KERNEL_OK")
</pallas_src>

<mosaic_0001>
module attributes {stable_mosaic.version = 11 : i64} {
  func.func @kernel(%arg0: i32, %arg1: memref<1x16x512xf32, #tpu.memory_space<vmem>>, %arg2: memref<8x16xbf16, #tpu.memory_space<vmem>>, %arg3: memref<8x216xbf16, #tpu.memory_space<vmem>>, %arg4: memref<16x8xbf16, #tpu.memory_space<vmem>>, %arg5: memref<8x1xf32, #tpu.memory_space<vmem>>, %arg6: memref<8x1xf32, #tpu.memory_space<vmem>>, %arg7: memref<16x1xf32, #tpu.memory_space<vmem>>, %arg8: memref<27x512xf32, #tpu.memory_space<vmem>>, %arg9: memref<1x16x512xf32, #tpu.memory_space<vmem>>, %arg10: memref<8x768xf32, #tpu.memory_space<vmem>>, %arg11: memref<216x512xf32, #tpu.memory_space<vmem>>) attributes {dimension_semantics = [#tpu.dimension_semantics<parallel>], iteration_bounds = array<i64: 2>, scalar_prefetch = 0 : i64, scratch_operands = 2 : i64, tpu.core_type = #tpu.core_type<tc>, window_params = [{transform_indices = @transform_0, window_bounds = array<i64: 1, 16, 512>}, {pipeline_mode = #tpu.pipeline_mode<synchronous>, transform_indices = @transform_1, window_bounds = array<i64: 8, 16>}, {pipeline_mode = #tpu.pipeline_mode<synchronous>, transform_indices = @transform_2, window_bounds = array<i64: 8, 216>}, {pipeline_mode = #tpu.pipeline_mode<synchronous>, transform_indices = @transform_3, window_bounds = array<i64: 16, 8>}, {pipeline_mode = #tpu.pipeline_mode<synchronous>, transform_indices = @transform_4, window_bounds = array<i64: 8, 1>}, {pipeline_mode = #tpu.pipeline_mode<synchronous>, transform_indices = @transform_5, window_bounds = array<i64: 8, 1>}, {pipeline_mode = #tpu.pipeline_mode<synchronous>, transform_indices = @transform_6, window_bounds = array<i64: 16, 1>}, {pipeline_mode = #tpu.pipeline_mode<synchronous>, transform_indices = @transform_7, window_bounds = array<i64: 27, 512>}, {transform_indices = @transform_8, window_bounds = array<i64: 1, 16, 512>}]} {
    %c0 = arith.constant 0 : index
    %c0_0 = arith.constant 0 : index
    %c0_1 = arith.constant 0 : index
    %0 = vector.load %arg1[%c0, %c0_0, %c0_1] : memref<1x16x512xf32, #tpu.memory_space<vmem>>, vector<1x16x512xf32>
    %1 = vector.shape_cast %0 : vector<1x16x512xf32> to vector<16x512xf32>
    %c0_2 = arith.constant 0 : index
    %c0_3 = arith.constant 0 : index
    %2 = vector.load %arg2[%c0_2, %c0_3] : memref<8x16xbf16, #tpu.memory_space<vmem>>, vector<8x16xbf16>
    %3 = arith.truncf %1 : vector<16x512xf32> to vector<16x512xbf16>
    %cst = arith.constant dense<0.000000e+00> : vector<8x512xf32>
    %4 = tpu.matmul %2, %3, %cst {dimension_numbers = #tpu.dot_dimension_numbers<[1], [0], [0], [1], [0, 0, 1, 1], [], []>} : vector<8x16xbf16>, vector<16x512xbf16>, vector<8x512xf32> -> vector<8x512xf32>
    %c0_4 = arith.constant 0 : index
    %c0_5 = arith.constant 0 : index
    %5 = vector.load %arg5[%c0_4, %c0_5] : memref<8x1xf32, #tpu.memory_space<vmem>>, vector<8x1xf32>
    %6 = vector.broadcast %5 : vector<8x1xf32> to vector<8x512xf32>
    %7 = arith.addf %4, %6 : vector<8x512xf32>
    %cst_6 = arith.constant 0.000000e+00 : f32
    %8 = vector.broadcast %cst_6 : f32 to vector<8x512xf32>
    %9 = arith.maximumf %7, %8 : vector<8x512xf32>
    %cst_7 = arith.constant 0.000000e+00 : f32
    %10 = vector.broadcast %cst_7 : f32 to vector<8x768xf32>
    %c0_8 = arith.constant 0 : index
    %c0_9 = arith.constant 0 : index
    %11 = vector.load %arg10[%c0_8, %c0_9] : memref<8x768xf32, #tpu.memory_space<vmem>>, vector<8x768xf32>
    tpu.vector_store %arg10[%c0_8, %c0_9], %10 {strides = array<i32>} : memref<8x768xf32, #tpu.memory_space<vmem>>, vector<8x768xf32>,
    %c0_10 = arith.constant 0 : index
    %c128 = arith.constant 128 : index
    %12 = vector.load %arg10[%c0_10, %c128] : memref<8x768xf32, #tpu.memory_space<vmem>>, vector<8x512xf32>
    tpu.vector_store %arg10[%c0_10, %c128], %9 {strides = array<i32>} : memref<8x768xf32, #tpu.memory_space<vmem>>, vector<8x512xf32>,
    %c0_11 = arith.constant 0 : index
    %c55 = arith.constant 55 : index
    %13 = vector.load %arg10[%c0_11, %c55] : memref<8x768xf32, #tpu.memory_space<vmem>>, vector<8x512xf32>
    %c0_12 = arith.constant 0 : index
    %c0_13 = arith.constant 0 : index
    %14 = vector.load %arg8[%c0_12, %c0_13] : memref<27x512xf32, #tpu.memory_space<vmem>>, vector<1x512xf32>
    %15 = vector.broadcast %14 : vector<1x512xf32> to vector<8x512xf32>
    %16 = arith.mulf %13, %15 : vector<8x512xf32>
    %c0_14 = arith.constant 0 : index
    %c0_15 = arith.constant 0 : index
    %17 = vector.load %arg11[%c0_14, %c0_15] : memref<216x512xf32, #tpu.memory_space<vmem>>, vector<8x512xf32>
    tpu.vector_store %arg11[%c0_14, %c0_15], %16 {strides = array<i32>} : memref<216x512xf32, #tpu.memory_space<vmem>>, vector<8x512xf32>,
    %c0_16 = arith.constant 0 : index
    %c56 = arith.constant 56 : index
    %18 = vector.load %arg10[%c0_16, %c56] : memref<8x768xf32, #tpu.memory_space<vmem>>, vector<8x512xf32>
    %c1 = arith.constant 1 : index
    %c0_17 = arith.constant 0 : index
    %19 = vector.load %arg8[%c1, %c0_17] : memref<27x512xf32, #tpu.memory_space<vmem>>, vector<1x512xf32>
    %20 = vector.broadcast %19 : vector<1x512xf32> to vector<8x512xf32>
    %21 = arith.mulf %18, %20 : vector<8x512xf32>
    %c8 = arith.constant 8 : index
    %c0_18 = arith.constant 0 : index
    %22 = vector.load %arg11[%c8, %c0_18] : memref<216x512xf32, #tpu.memory_space<vmem>>, vector<8x512xf32>
    tpu.vector_store %arg11[%c8, %c0_18], %21 {strides = array<i32>} : memref<216x512xf32, #tpu.memory_space<vmem>>, vector<8x512xf32>,
    %c0_19 = arith.constant 0 : index
    %c57 = arith.constant 57 : index
    %23 = vector.load %arg10[%c0_19, %c57] : memref<8x768xf32, #tpu.memory_space<vmem>>, vector<8x512xf32>
    %c2 = arith.constant 2 : index
    %c0_20 = arith.constant 0 : index
    %24 = vector.load %arg8[%c2, %c0_20] : memref<27x512xf32, #tpu.memory_space<vmem>>, vector<1x512xf32>
    %25 = vector.broadcast %24 : vector<1x512xf32> to vector<8x512xf32>
    %26 = arith.mulf %23, %25 : vector<8x512xf32>
    %c16 = arith.constant 16 : index
    %c0_21 = arith.constant 0 : index
    %27 = vector.load %arg11[%c16, %c0_21] : memref<216x512xf32, #tpu.memory_space<vmem>>, vector<8x512xf32>
    tpu.vector_store %arg11[%c16, %c0_21], %26 {strides = array<i32>} : memref<216x512xf32, #tpu.memory_space<vmem>>, vector<8x512xf32>,
    %c0_22 = arith.constant 0 : index
    %c63 = arith.constant 63 : index
    %28 = vector.load %arg10[%c0_22, %c63] : memref<8x768xf32, #tpu.memory_space<vmem>>, vector<8x512xf32>
    %c3 = arith.constant 3 : index
    %c0_23 = arith.constant 0 : index
    %29 = vector.load %arg8[%c3, %c0_23] : memref<27x512xf32, #tpu.memory_space<vmem>>, vector<1x512xf32>
    %30 = vector.broadcast %29 : vector<1x512xf32> to vector<8x512xf32>
    %31 = arith.mulf %28, %30 : vector<8x512xf32>
    %c24 = arith.constant 24 : index
    %c0_24 = arith.constant 0 : index
    %32 = vector.load %arg11[%c24, %c0_24] : memref<216x512xf32, #tpu.memory_space<vmem>>, vector<8x512xf32>
    tpu.vector_store %arg11[%c24, %c0_24], %31 {strides = array<i32>} : memref<216x512xf32, #tpu.memory_space<vmem>>, vector<8x512xf32>,
    %c0_25 = arith.constant 0 : index
    %c64 = arith.constant 64 : index
    %33 = vector.load %arg10[%c0_25, %c64] : memref<8x768xf32, #tpu.memory_space<vmem>>, vector<8x512xf32>
    %c4 = arith.constant 4 : index
    %c0_26 = arith.constant 0 : index
    %34 = vector.load %arg8[%c4, %c0_26] : memref<27x512xf32, #tpu.memory_space<vmem>>, vector<1x512xf32>
    %35 = vector.broadcast %34 : vector<1x512xf32> to vector<8x512xf32>
    %36 = arith.mulf %33, %35 : vector<8x512xf32>
    %c32 = arith.constant 32 : index
    %c0_27 = arith.constant 0 : index
    %37 = vector.load %arg11[%c32, %c0_27] : memref<216x512xf32, #tpu.memory_space<vmem>>, vector<8x512xf32>
    tpu.vector_store %arg11[%c32, %c0_27], %36 {strides = array<i32>} : memref<216x512xf32, #tpu.memory_space<vmem>>, vector<8x512xf32>,
    %c0_28 = arith.constant 0 : index
    %c65 = arith.constant 65 : index
    %38 = vector.load %arg10[%c0_28, %c65] : memref<8x768xf32, #tpu.memory_space<vmem>>, vector<8x512xf32>
    %c5 = arith.constant 5 : index
    %c0_29 = arith.constant 0 : index
    %39 = vector.load %arg8[%c5, %c0_29] : memref<27x512xf32, #tpu.memory_space<vmem>>, vector<1x512xf32>
    %40 = vector.broadcast %39 : vector<1x512xf32> to vector<8x512xf32>
    %41 = arith.mulf %38, %40 : vector<8x512xf32>
    %c40 = arith.constant 40 : index
    %c0_30 = arith.constant 0 : index
    %42 = vector.load %arg11[%c40, %c0_30] : memref<216x512xf32, #tpu.memory_space<vmem>>, vector<8x512xf32>
    tpu.vector_store %arg11[%c40, %c0_30], %41 {strides = array<i32>} : memref<216x512xf32, #tpu.memory_space<vmem>>, vector<8x512xf32>,
    %c0_31 = arith.constant 0 : index
    %c71 = arith.constant 71 : index
    %43 = vector.load %arg10[%c0_31, %c71] : memref<8x768xf32, #tpu.memory_space<vmem>>, vector<8x512xf32>
    %c6 = arith.constant 6 : index
    %c0_32 = arith.constant 0 : index
    %44 = vector.load %arg8[%c6, %c0_32] : memref<27x512xf32, #tpu.memory_space<vmem>>, vector<1x512xf32>
    %45 = vector.broadcast %44 : vector<1x512xf32> to vector<8x512xf32>
    %46 = arith.mulf %43, %45 : vector<8x512xf32>
    %c48 = arith.constant 48 : index
    %c0_33 = arith.constant 0 : index
    %47 = vector.load %arg11[%c48, %c0_33] : memref<216x512xf32, #tpu.memory_space<vmem>>, vector<8x512xf32>
    tpu.vector_store %arg11[%c48, %c0_33], %46 {strides = array<i32>} : memref<216x512xf32, #tpu.memory_space<vmem>>, vector<8x512xf32>,
    %c0_34 = arith.constant 0 : index
    %c72 = arith.constant 72 : index
    %48 = vector.load %arg10[%c0_34, %c72] : memref<8x768xf32, #tpu.memory_space<vmem>>, vector<8x512xf32>
    %c7 = arith.constant 7 : index
    %c0_35 = arith.constant 0 : index
    %49 = vector.load %arg8[%c7, %c0_35] : memref<27x512xf32, #tpu.memory_space<vmem>>, vector<1x512xf32>
    %50 = vector.broadcast %49 : vector<1x512xf32> to vector<8x512xf32>
    %51 = arith.mulf %48, %50 : vector<8x512xf32>
    %c56_36 = arith.constant 56 : index
    %c0_37 = arith.constant 0 : index
    %52 = vector.load %arg11[%c56_36, %c0_37] : memref<216x512xf32, #tpu.memory_space<vmem>>, vector<8x512xf32>
    tpu.vector_store %arg11[%c56_36, %c0_37], %51 {strides = array<i32>} : memref<216x512xf32, #tpu.memory_space<vmem>>, vector<8x512xf32>,
    %c0_38 = arith.constant 0 : index
    %c73 = arith.constant 73 : index
    %53 = vector.load %arg10[%c0_38, %c73] : memref<8x768xf32, #tpu.memory_space<vmem>>, vector<8x512xf32>
    %c8_39 = arith.constant 8 : index
    %c0_40 = arith.constant 0 : index
    %54 = vector.load %arg8[%c8_39, %c0_40] : memref<27x512xf32, #tpu.memory_space<vmem>>, vector<1x512xf32>
    %55 = vector.broadcast %54 : vector<1x512xf32> to vector<8x512xf32>
    %56 = arith.mulf %53, %55 : vector<8x512xf32>
    %c64_41 = arith.constant 64 : index
    %c0_42 = arith.constant 0 : index
    %57 = vector.load %arg11[%c64_41, %c0_42] : memref<216x512xf32, #tpu.memory_space<vmem>>, vector<8x512xf32>
    tpu.vector_store %arg11[%c64_41, %c0_42], %56 {strides = array<i32>} : memref<216x512xf32, #tpu.memory_space<vmem>>, vector<8x512xf32>,
    %c0_43 = arith.constant 0 : index
    %c119 = arith.constant 119 : index
    %58 = vector.load %arg10[%c0_43, %c119] : memref<8x768xf32, #tpu.memory_space<vmem>>, vector<8x512xf32>
    %c9 = arith.constant 9 : index
    %c0_44 = arith.constant 0 : index
    %59 = vector.load %arg8[%c9, %c0_44] : memref<27x512xf32, #tpu.memory_space<vmem>>, vector<1x512xf32>
    %60 = vector.broadcast %59 : vector<1x512xf32> to vector<8x512xf32>
    %61 = arith.mulf %58, %60 : vector<8x512xf32>
    %c72_45 = arith.constant 72 : index
    %c0_46 = arith.constant 0 : index
    %62 = vector.load %arg11[%c72_45, %c0_46] : memref<216x512xf32, #tpu.memory_space<vmem>>, vector<8x512xf32>
    tpu.vector_store %arg11[%c72_45, %c0_46], %61 {strides = array<i32>} : memref<216x512xf32, #tpu.memory_space<vmem>>, vector<8x512xf32>,
    %c0_47 = arith.constant 0 : index
    %c120 = arith.constant 120 : index
    %63 = vector.load %arg10[%c0_47, %c120] : memref<8x768xf32, #tpu.memory_space<vmem>>, vector<8x512xf32>
    %c10 = arith.constant 10 : index
    %c0_48 = arith.constant 0 : index
    %64 = vector.load %arg8[%c10, %c0_48] : memref<27x512xf32, #tpu.memory_space<vmem>>, vector<1x512xf32>
    %65 = vector.broadcast %64 : vector<1x512xf32> to vector<8x512xf32>
    %66 = arith.mulf %63, %65 : vector<8x512xf32>
    %c80 = arith.constant 80 : index
    %c0_49 = arith.constant 0 : index
    %67 = vector.load %arg11[%c80, %c0_49] : memref<216x512xf32, #tpu.memory_space<vmem>>, vector<8x512xf32>
    tpu.vector_store %arg11[%c80, %c0_49], %66 {strides = array<i32>} : memref<216x512xf32, #tpu.memory_space<vmem>>, vector<8x512xf32>,
    %c0_50 = arith.constant 0 : index
    %c121 = arith.constant 121 : index
    %68 = vector.load %arg10[%c0_50, %c121] : memref<8x768xf32, #tpu.memory_space<vmem>>, vector<8x512xf32>
    %c11 = arith.constant 11 : index
    %c0_51 = arith.constant 0 : index
    %69 = vector.load %arg8[%c11, %c0_51] : memref<27x512xf32, #tpu.memory_space<vmem>>, vector<1x512xf32>
    %70 = vector.broadcast %69 : vector<1x512xf32> to vector<8x512xf32>
    %71 = arith.mulf %68, %70 : vector<8x512xf32>
    %c88 = arith.constant 88 : index
    %c0_52 = arith.constant 0 : index
    %72 = vector.load %arg11[%c88, %c0_52] : memref<216x512xf32, #tpu.memory_space<vmem>>, vector<8x512xf32>
    tpu.vector_store %arg11[%c88, %c0_52], %71 {strides = array<i32>} : memref<216x512xf32, #tpu.memory_space<vmem>>, vector<8x512xf32>,
    %c0_53 = arith.constant 0 : index
    %c127 = arith.constant 127 : index
    %73 = vector.load %arg10[%c0_53, %c127] : memref<8x768xf32, #tpu.memory_space<vmem>>, vector<8x512xf32>
    %c12 = arith.constant 12 : index
    %c0_54 = arith.constant 0 : index
    %74 = vector.load %arg8[%c12, %c0_54] : memref<27x512xf32, #tpu.memory_space<vmem>>, vector<1x512xf32>
    %75 = vector.broadcast %74 : vector<1x512xf32> to vector<8x512xf32>
    %76 = arith.mulf %73, %75 : vector<8x512xf32>
    %c96 = arith.constant 96 : index
    %c0_55 = arith.constant 0 : index
    %77 = vector.load %arg11[%c96, %c0_55] : memref<216x512xf32, #tpu.memory_space<vmem>>, vector<8x512xf32>
    tpu.vector_store %arg11[%c96, %c0_55], %76 {strides = array<i32>} : memref<216x512xf32, #tpu.memory_space<vmem>>, vector<8x512xf32>,
    %c0_56 = arith.constant 0 : index
    %c128_57 = arith.constant 128 : index
    %78 = vector.load %arg10[%c0_56, %c128_57] : memref<8x768xf32, #tpu.memory_space<vmem>>, vector<8x512xf32>
    %c13 = arith.constant 13 : index
    %c0_58 = arith.constant 0 : index
    %79 = vector.load %arg8[%c13, %c0_58] : memref<27x512xf32, #tpu.memory_space<vmem>>, vector<1x512xf32>
    %80 = vector.broadcast %79 : vector<1x512xf32> to vector<8x512xf32>
    %81 = arith.mulf %78, %80 : vector<8x512xf32>
    %c104 = arith.constant 104 : index
    %c0_59 = arith.constant 0 : index
    %82 = vector.load %arg11[%c104, %c0_59] : memref<216x512xf32, #tpu.memory_space<vmem>>, vector<8x512xf32>
    tpu.vector_store %arg11[%c104, %c0_59], %81 {strides = array<i32>} : memref<216x512xf32, #tpu.memory_space<vmem>>, vector<8x512xf32>,
    %c0_60 = arith.constant 0 : index
    %c129 = arith.constant 129 : index
    %83 = vector.load %arg10[%c0_60, %c129] : memref<8x768xf32, #tpu.memory_space<vmem>>, vector<8x512xf32>
    %c14 = arith.constant 14 : index
    %c0_61 = arith.constant 0 : index
    %84 = vector.load %arg8[%c14, %c0_61] : memref<27x512xf32, #tpu.memory_space<vmem>>, vector<1x512xf32>
    %85 = vector.broadcast %84 : vector<1x512xf32> to vector<8x512xf32>
    %86 = arith.mulf %83, %85 : vector<8x512xf32>
    %c112 = arith.constant 112 : index
    %c0_62 = arith.constant 0 : index
    %87 = vector.load %arg11[%c112, %c0_62] : memref<216x512xf32, #tpu.memory_space<vmem>>, vector<8x512xf32>
    tpu.vector_store %arg11[%c112, %c0_62], %86 {strides = array<i32>} : memref<216x512xf32, #tpu.memory_space<vmem>>, vector<8x512xf32>,
    %c0_63 = arith.constant 0 : index
    %c135 = arith.constant 135 : index
    %88 = vector.load %arg10[%c0_63, %c135] : memref<8x768xf32, #tpu.memory_space<vmem>>, vector<8x512xf32>
    %c15 = arith.constant 15 : index
    %c0_64 = arith.constant 0 : index
    %89 = vector.load %arg8[%c15, %c0_64] : memref<27x512xf32, #tpu.memory_space<vmem>>, vector<1x512xf32>
    %90 = vector.broadcast %89 : vector<1x512xf32> to vector<8x512xf32>
    %91 = arith.mulf %88, %90 : vector<8x512xf32>
    %c120_65 = arith.constant 120 : index
    %c0_66 = arith.constant 0 : index
    %92 = vector.load %arg11[%c120_65, %c0_66] : memref<216x512xf32, #tpu.memory_space<vmem>>, vector<8x512xf32>
    tpu.vector_store %arg11[%c120_65, %c0_66], %91 {strides = array<i32>} : memref<216x512xf32, #tpu.memory_space<vmem>>, vector<8x512xf32>,
    %c0_67 = arith.constant 0 : index
    %c136 = arith.constant 136 : index
    %93 = vector.load %arg10[%c0_67, %c136] : memref<8x768xf32, #tpu.memory_space<vmem>>, vector<8x512xf32>
    %c16_68 = arith.constant 16 : index
    %c0_69 = arith.constant 0 : index
    %94 = vector.load %arg8[%c16_68, %c0_69] : memref<27x512xf32, #tpu.memory_space<vmem>>, vector<1x512xf32>
    %95 = vector.broadcast %94 : vector<1x512xf32> to vector<8x512xf32>
    %96 = arith.mulf %93, %95 : vector<8x512xf32>
    %c128_70 = arith.constant 128 : index
    %c0_71 = arith.constant 0 : index
    %97 = vector.load %arg11[%c128_70, %c0_71] : memref<216x512xf32, #tpu.memory_space<vmem>>, vector<8x512xf32>
    tpu.vector_store %arg11[%c128_70, %c0_71], %96 {strides = array<i32>} : memref<216x512xf32, #tpu.memory_space<vmem>>, vector<8x512xf32>,
    %c0_72 = arith.constant 0 : index
    %c137 = arith.constant 137 : index
    %98 = vector.load %arg10[%c0_72, %c137] : memref<8x768xf32, #tpu.memory_space<vmem>>, vector<8x512xf32>
    %c17 = arith.constant 17 : index
    %c0_73 = arith.constant 0 : index
    %99 = vector.load %arg8[%c17, %c0_73] : memref<27x512xf32, #tpu.memory_space<vmem>>, vector<1x512xf32>
    %100 = vector.broadcast %99 : vector<1x512xf32> to vector<8x512xf32>
    %101 = arith.mulf %98, %100 : vector<8x512xf32>
    %c136_74 = arith.constant 136 : index
    %c0_75 = arith.constant 0 : index
    %102 = vector.load %arg11[%c136_74, %c0_75] : memref<216x512xf32, #tpu.memory_space<vmem>>, vector<8x512xf32>
    tpu.vector_store %arg11[%c136_74, %c0_75], %101 {strides = array<i32>} : memref<216x512xf32, #tpu.memory_space<vmem>>, vector<8x512xf32>,
    %c0_76 = arith.constant 0 : index
    %c183 = arith.constant 183 : index
    %103 = vector.load %arg10[%c0_76, %c183] : memref<8x768xf32, #tpu.memory_space<vmem>>, vector<8x512xf32>
    %c18 = arith.constant 18 : index
    %c0_77 = arith.constant 0 : index
    %104 = vector.load %arg8[%c18, %c0_77] : memref<27x512xf32, #tpu.memory_space<vmem>>, vector<1x512xf32>
    %105 = vector.broadcast %104 : vector<1x512xf32> to vector<8x512xf32>
    %106 = arith.mulf %103, %105 : vector<8x512xf32>
    %c144 = arith.constant 144 : index
    %c0_78 = arith.constant 0 : index
    %107 = vector.load %arg11[%c144, %c0_78] : memref<216x512xf32, #tpu.memory_space<vmem>>, vector<8x512xf32>
    tpu.vector_store %arg11[%c144, %c0_78], %106 {strides = array<i32>} : memref<216x512xf32, #tpu.memory_space<vmem>>, vector<8x512xf32>,
    %c0_79 = arith.constant 0 : index
    %c184 = arith.constant 184 : index
    %108 = vector.load %arg10[%c0_79, %c184] : memref<8x768xf32, #tpu.memory_space<vmem>>, vector<8x512xf32>
    %c19 = arith.constant 19 : index
    %c0_80 = arith.constant 0 : index
    %109 = vector.load %arg8[%c19, %c0_80] : memref<27x512xf32, #tpu.memory_space<vmem>>, vector<1x512xf32>
    %110 = vector.broadcast %109 : vector<1x512xf32> to vector<8x512xf32>
    %111 = arith.mulf %108, %110 : vector<8x512xf32>
    %c152 = arith.constant 152 : index
    %c0_81 = arith.constant 0 : index
    %112 = vector.load %arg11[%c152, %c0_81] : memref<216x512xf32, #tpu.memory_space<vmem>>, vector<8x512xf32>
    tpu.vector_store %arg11[%c152, %c0_81], %111 {strides = array<i32>} : memref<216x512xf32, #tpu.memory_space<vmem>>, vector<8x512xf32>,
    %c0_82 = arith.constant 0 : index
    %c185 = arith.constant 185 : index
    %113 = vector.load %arg10[%c0_82, %c185] : memref<8x768xf32, #tpu.memory_space<vmem>>, vector<8x512xf32>
    %c20 = arith.constant 20 : index
    %c0_83 = arith.constant 0 : index
    %114 = vector.load %arg8[%c20, %c0_83] : memref<27x512xf32, #tpu.memory_space<vmem>>, vector<1x512xf32>
    %115 = vector.broadcast %114 : vector<1x512xf32> to vector<8x512xf32>
    %116 = arith.mulf %113, %115 : vector<8x512xf32>
    %c160 = arith.constant 160 : index
    %c0_84 = arith.constant 0 : index
    %117 = vector.load %arg11[%c160, %c0_84] : memref<216x512xf32, #tpu.memory_space<vmem>>, vector<8x512xf32>
    tpu.vector_store %arg11[%c160, %c0_84], %116 {strides = array<i32>} : memref<216x512xf32, #tpu.memory_space<vmem>>, vector<8x512xf32>,
    %c0_85 = arith.constant 0 : index
    %c191 = arith.constant 191 : index
    %118 = vector.load %arg10[%c0_85, %c191] : memref<8x768xf32, #tpu.memory_space<vmem>>, vector<8x512xf32>
    %c21 = arith.constant 21 : index
    %c0_86 = arith.constant 0 : index
    %119 = vector.load %arg8[%c21, %c0_86] : memref<27x512xf32, #tpu.memory_space<vmem>>, vector<1x512xf32>
    %120 = vector.broadcast %119 : vector<1x512xf32> to vector<8x512xf32>
    %121 = arith.mulf %118, %120 : vector<8x512xf32>
    %c168 = arith.constant 168 : index
    %c0_87 = arith.constant 0 : index
    %122 = vector.load %arg11[%c168, %c0_87] : memref<216x512xf32, #tpu.memory_space<vmem>>, vector<8x512xf32>
    tpu.vector_store %arg11[%c168, %c0_87], %121 {strides = array<i32>} : memref<216x512xf32, #tpu.memory_space<vmem>>, vector<8x512xf32>,
    %c0_88 = arith.constant 0 : index
    %c192 = arith.constant 192 : index
    %123 = vector.load %arg10[%c0_88, %c192] : memref<8x768xf32, #tpu.memory_space<vmem>>, vector<8x512xf32>
    %c22 = arith.constant 22 : index
    %c0_89 = arith.constant 0 : index
    %124 = vector.load %arg8[%c22, %c0_89] : memref<27x512xf32, #tpu.memory_space<vmem>>, vector<1x512xf32>
    %125 = vector.broadcast %124 : vector<1x512xf32> to vector<8x512xf32>
    %126 = arith.mulf %123, %125 : vector<8x512xf32>
    %c176 = arith.constant 176 : index
    %c0_90 = arith.constant 0 : index
    %127 = vector.load %arg11[%c176, %c0_90] : memref<216x512xf32, #tpu.memory_space<vmem>>, vector<8x512xf32>
    tpu.vector_store %arg11[%c176, %c0_90], %126 {strides = array<i32>} : memref<216x512xf32, #tpu.memory_space<vmem>>, vector<8x512xf32>,
    %c0_91 = arith.constant 0 : index
    %c193 = arith.constant 193 : index
    %128 = vector.load %arg10[%c0_91, %c193] : memref<8x768xf32, #tpu.memory_space<vmem>>, vector<8x512xf32>
    %c23 = arith.constant 23 : index
    %c0_92 = arith.constant 0 : index
    %129 = vector.load %arg8[%c23, %c0_92] : memref<27x512xf32, #tpu.memory_space<vmem>>, vector<1x512xf32>
    %130 = vector.broadcast %129 : vector<1x512xf32> to vector<8x512xf32>
    %131 = arith.mulf %128, %130 : vector<8x512xf32>
    %c184_93 = arith.constant 184 : index
    %c0_94 = arith.constant 0 : index
    %132 = vector.load %arg11[%c184_93, %c0_94] : memref<216x512xf32, #tpu.memory_space<vmem>>, vector<8x512xf32>
    tpu.vector_store %arg11[%c184_93, %c0_94], %131 {strides = array<i32>} : memref<216x512xf32, #tpu.memory_space<vmem>>, vector<8x512xf32>,
    %c0_95 = arith.constant 0 : index
    %c199 = arith.constant 199 : index
    %133 = vector.load %arg10[%c0_95, %c199] : memref<8x768xf32, #tpu.memory_space<vmem>>, vector<8x512xf32>
    %c24_96 = arith.constant 24 : index
    %c0_97 = arith.constant 0 : index
    %134 = vector.load %arg8[%c24_96, %c0_97] : memref<27x512xf32, #tpu.memory_space<vmem>>, vector<1x512xf32>
    %135 = vector.broadcast %134 : vector<1x512xf32> to vector<8x512xf32>
    %136 = arith.mulf %133, %135 : vector<8x512xf32>
    %c192_98 = arith.constant 192 : index
    %c0_99 = arith.constant 0 : index
    %137 = vector.load %arg11[%c192_98, %c0_99] : memref<216x512xf32, #tpu.memory_space<vmem>>, vector<8x512xf32>
    tpu.vector_store %arg11[%c192_98, %c0_99], %136 {strides = array<i32>} : memref<216x512xf32, #tpu.memory_space<vmem>>, vector<8x512xf32>,
    %c0_100 = arith.constant 0 : index
    %c200 = arith.constant 200 : index
    %138 = vector.load %arg10[%c0_100, %c200] : memref<8x768xf32, #tpu.memory_space<vmem>>, vector<8x512xf32>
    %c25 = arith.constant 25 : index
    %c0_101 = arith.constant 0 : index
    %139 = vector.load %arg8[%c25, %c0_101] : memref<27x512xf32, #tpu.memory_space<vmem>>, vector<1x512xf32>
    %140 = vector.broadcast %139 : vector<1x512xf32> to vector<8x512xf32>
    %141 = arith.mulf %138, %140 : vector<8x512xf32>
    %c200_102 = arith.constant 200 : index
    %c0_103 = arith.constant 0 : index
    %142 = vector.load %arg11[%c200_102, %c0_103] : memref<216x512xf32, #tpu.memory_space<vmem>>, vector<8x512xf32>
    tpu.vector_store %arg11[%c200_102, %c0_103], %141 {strides = array<i32>} : memref<216x512xf32, #tpu.memory_space<vmem>>, vector<8x512xf32>,
    %c0_104 = arith.constant 0 : index
    %c201 = arith.constant 201 : index
    %143 = vector.load %arg10[%c0_104, %c201] : memref<8x768xf32, #tpu.memory_space<vmem>>, vector<8x512xf32>
    %c26 = arith.constant 26 : index
    %c0_105 = arith.constant 0 : index
    %144 = vector.load %arg8[%c26, %c0_105] : memref<27x512xf32, #tpu.memory_space<vmem>>, vector<1x512xf32>
    %145 = vector.broadcast %144 : vector<1x512xf32> to vector<8x512xf32>
    %146 = arith.mulf %143, %145 : vector<8x512xf32>
    %c208 = arith.constant 208 : index
    %c0_106 = arith.constant 0 : index
    %147 = vector.load %arg11[%c208, %c0_106] : memref<216x512xf32, #tpu.memory_space<vmem>>, vector<8x512xf32>
    tpu.vector_store %arg11[%c208, %c0_106], %146 {strides = array<i32>} : memref<216x512xf32, #tpu.memory_space<vmem>>, vector<8x512xf32>,
    %c0_107 = arith.constant 0 : index
    %c0_108 = arith.constant 0 : index
    %148 = vector.load %arg3[%c0_107, %c0_108] : memref<8x216xbf16, #tpu.memory_space<vmem>>, vector<8x216xbf16>
    %c0_109 = arith.constant 0 : index
    %c0_110 = arith.constant 0 : index
    %149 = vector.load %arg11[%c0_109, %c0_110] : memref<216x512xf32, #tpu.memory_space<vmem>>, vector<216x512xf32>
    %150 = arith.truncf %149 : vector<216x512xf32> to vector<216x512xbf16>
    %cst_111 = arith.constant dense<0.000000e+00> : vector<8x512xf32>
    %151 = tpu.matmul %148, %150, %cst_111 {dimension_numbers = #tpu.dot_dimension_numbers<[1], [0], [0], [1], [0, 0, 1, 1], [], []>} : vector<8x216xbf16>, vector<216x512xbf16>, vector<8x512xf32> -> vector<8x512xf32>
    %c0_112 = arith.constant 0 : index
    %c0_113 = arith.constant 0 : index
    %152 = vector.load %arg6[%c0_112, %c0_113] : memref<8x1xf32, #tpu.memory_space<vmem>>, vector<8x1xf32>
    %153 = vector.broadcast %152 : vector<8x1xf32> to vector<8x512xf32>
    %154 = arith.addf %151, %153 : vector<8x512xf32>
    %cst_114 = arith.constant 0.000000e+00 : f32
    %155 = vector.broadcast %cst_114 : f32 to vector<8x512xf32>
    %156 = arith.maximumf %154, %155 : vector<8x512xf32>
    %c0_115 = arith.constant 0 : index
    %c0_116 = arith.constant 0 : index
    %157 = vector.load %arg4[%c0_115, %c0_116] : memref<16x8xbf16, #tpu.memory_space<vmem>>, vector<16x8xbf16>
    %158 = arith.truncf %156 : vector<8x512xf32> to vector<8x512xbf16>
    %cst_117 = arith.constant dense<0.000000e+00> : vector<16x512xf32>
    %159 = tpu.matmul %157, %158, %cst_117 {dimension_numbers = #tpu.dot_dimension_numbers<[1], [0], [0], [1], [0, 0, 1, 1], [], []>} : vector<16x8xbf16>, vector<8x512xbf16>, vector<16x512xf32> -> vector<16x512xf32>
    %c0_118 = arith.constant 0 : index
    %c0_119 = arith.constant 0 : index
    %160 = vector.load %arg7[%c0_118, %c0_119] : memref<16x1xf32, #tpu.memory_space<vmem>>, vector<16x1xf32>
    %161 = vector.broadcast %160 : vector<16x1xf32> to vector<16x512xf32>
    %162 = arith.addf %159, %161 : vector<16x512xf32>
    %163 = arith.addf %162, %1 : vector<16x512xf32>
    %cst_120 = arith.constant 0.000000e+00 : f32
    %164 = vector.broadcast %cst_120 : f32 to vector<16x512xf32>
    %165 = arith.maximumf %163, %164 : vector<16x512xf32>
    %c0_121 = arith.constant 0 : index
    %c0_122 = arith.constant 0 : index
    %c0_123 = arith.constant 0 : index
    %166 = vector.load %arg9[%c0_121, %c0_122, %c0_123] : memref<1x16x512xf32, #tpu.memory_space<vmem>>, vector<1x16x512xf32>
    %167 = vector.shape_cast %166 : vector<1x16x512xf32> to vector<16x512xf32>
    %168 = vector.shape_cast %165 : vector<16x512xf32> to vector<1x16x512xf32>
    tpu.vector_store %arg9[%c0_121, %c0_122, %c0_123], %168 {strides = array<i32>} : memref<1x16x512xf32, #tpu.memory_space<vmem>>, vector<1x16x512xf32>,
    return
  }
  func.func @transform_0(%arg0: i32) -> (i32, i32, i32) {
    %c0_i32 = arith.constant 0 : i32
    %c0_i32_0 = arith.constant 0 : i32
    %c0_i32_1 = arith.constant 0 : i32
    return %arg0, %c0_i32, %c0_i32_0 : i32, i32, i32
  }
  func.func @transform_1(%arg0: i32) -> (i32, i32) {
    %c0_i32 = arith.constant 0 : i32
    %c0_i32_0 = arith.constant 0 : i32
    %c0_i32_1 = arith.constant 0 : i32
    return %c0_i32, %c0_i32_0 : i32, i32
  }
  func.func @transform_2(%arg0: i32) -> (i32, i32) {
    %c0_i32 = arith.constant 0 : i32
    %c0_i32_0 = arith.constant 0 : i32
    %c0_i32_1 = arith.constant 0 : i32
    return %c0_i32, %c0_i32_0 : i32, i32
  }
  func.func @transform_3(%arg0: i32) -> (i32, i32) {
    %c0_i32 = arith.constant 0 : i32
    %c0_i32_0 = arith.constant 0 : i32
    %c0_i32_1 = arith.constant 0 : i32
    return %c0_i32, %c0_i32_0 : i32, i32
  }
  func.func @transform_4(%arg0: i32) -> (i32, i32) {
    %c0_i32 = arith.constant 0 : i32
    %c0_i32_0 = arith.constant 0 : i32
    %c0_i32_1 = arith.constant 0 : i32
    return %c0_i32, %c0_i32_0 : i32, i32
  }
  func.func @transform_5(%arg0: i32) -> (i32, i32) {
    %c0_i32 = arith.constant 0 : i32
    %c0_i32_0 = arith.constant 0 : i32
    %c0_i32_1 = arith.constant 0 : i32
    return %c0_i32, %c0_i32_0 : i32, i32
  }
  func.func @transform_6(%arg0: i32) -> (i32, i32) {
    %c0_i32 = arith.constant 0 : i32
    %c0_i32_0 = arith.constant 0 : i32
    %c0_i32_1 = arith.constant 0 : i32
    return %c0_i32, %c0_i32_0 : i32, i32
  }
  func.func @transform_7(%arg0: i32) -> (i32, i32) {
    %c0_i32 = arith.constant 0 : i32
    %c0_i32_0 = arith.constant 0 : i32
    %c0_i32_1 = arith.constant 0 : i32
    return %c0_i32, %c0_i32_0 : i32, i32
  }
  func.func @transform_8(%arg0: i32) -> (i32, i32, i32) {
    %c0_i32 = arith.constant 0 : i32
    %c0_i32_0 = arith.constant 0 : i32
    %c0_i32_1 = arith.constant 0 : i32
    return %arg0, %c0_i32, %c0_i32_0 : i32, i32, i32
  }
}

</mosaic_0001>

<bundles_post_ra>
// kernel: resnext_block_c_forward.1
= control target key start
LH: loop header
LB: loop body
LE: loop exit
PB: predicated region body
PF: predicated region fallthrough
CT: control target
= control target key end

     0   :  { %s2884_s27 = smov 0   ;;  %s4383_s0 = inlined_call_operand.vmem [shape: f32[2,16,512], index: 0, kind: input, shape index: {}]   ;;  %s4384_s1 = inlined_call_operand.vmem [shape: bf16[8,16], index: 1, kind: input, shape index: {}]   ;;  %s4385_s2 = inlined_call_operand.vmem [shape: bf16[8,216], index: 2, kind: input, shape index: {}]   ;;  %s4386_s3 = inlined_call_operand.vmem [shape: bf16[16,8], index: 3, kind: input, shape index: {}]   ;;  %s4387_s4 = inlined_call_operand.vmem [shape: f32[8,1], index: 4, kind: input, shape index: {}]   ;;  %s4388_s5 = inlined_call_operand.vmem [shape: f32[8,1], index: 5, kind: input, shape index: {}]   ;;  %s4389_s6 = inlined_call_operand.vmem [shape: f32[16,1], index: 6, kind: input, shape index: {}]   ;;  %s4390_s7 = inlined_call_operand.vmem [shape: f32[27,512], index: 7, kind: input, shape index: {}]   ;;  %s4391_s8 = inlined_call_operand.vmem [shape: f32[2,16,512], index: 8, kind: output, shape index: {}]  }
   0x1 LB: > { %s2470_s28 = sadd.s32 4294967295, %s2819_s27   ;;  %p2474_p0 = scmp.ge.s32.totalorder %s2819_s27, 1  ;;  %s2819_s27 = sphi %s2884_s27, %s18_s27  }
   0x2   : > { %p262_p1 = scmp.lt.s32.totalorder %s2819_s27, 3 }
   0x4   : > { %p263_p2 = pnand %p2474_p0, %p262_p1 }
   0x6   : > { %266 = sbr.rel (%p263_p2) target bundleno = 1388 (0x56c), region = 52 }
   0xb   : > { %v320_v0 = vld [vmem:[%s4387_s4] sm:$0xff]  ;;  %v2821_v2 = vmov 0   ;;  %p296_p3 = scmp.lt.s32.totalorder %s2470_s28, 1  ;;  %s2822_s11 = smov 55   ;;  %vm326_vm0 = vcmask 130048   ;;  %vm415_vm1 = vcmask 449536  }
   0xc   : > { %v401_v1 = vld [vmem:[%s4390_s7] ss:$8 sm:$0xf]  ;;  %2552 = vset.pattern.permute.xlu0 %v2821_v2  ;;  %2803 = vset.pattern.permute.xlu2 %v2821_v2  ;;  %v2483_v5 = vld [vmem:[%s4390_s7 + $0x1] ss:$8 sm:$0xf] }
   0xd   : > { %v406_v3 = vperm.slane %v401_v1, 3  ;;  %v404_v4 = vperm.slane %v401_v1, 1  ;;  %323 = vperm.xlu0 %2552, %v320_v0   ;;  %2804 = vset.pattern.permute.xlu1 %v2821_v2  ;;  %s4534_s28 = smov (!%p296_p3, %s2470_s28), 1  ;;  %v403_v6 = vperm.slane %v401_v1, 0  ;;  %v465_v14 = vperm.slane %v2483_v5, 0  ;;  %s2823_s20 = smov 56  }
   0xe   : > { %s4394_s12 = sshll.u32 %s4534_s28, 6  ;;  %v405_v19 = vperm.slane %v401_v1, 2  ;;  %v315_v21 = vld [vmem:[%s4384_s1] sm:$0xf]  ;;  %v466_v22 = vperm.slane %v2483_v5, 1  ;;  %v468_v23 = vperm.slane %v2483_v5, 3 }
   0xf   : > { %413 = vrot.lane.b32.xlu2 %v406_v3, %s2822_s11  ;;  %409 = vrot.lane.b32.xlu1 %v404_v4, %s2822_s11  ;;  %s2911_s17 = scalar_lea.vmem %s4383_s0, %s4394_s12  ;;  %v467_v24 = vperm.slane %v2483_v5, 2  ;;  %v2484_v25 = vld [vmem:[%s4390_s7 + $0x2] ss:$8 sm:$0xf]  ;;  %s2824_s23 = smov 57   ;;  %vm477_vm2 = vcmask 457728  }
  0x10   : > { %v307_v7 = vld [vmem:[%s2911_s17] sm:$0xff]  ;;  %v308_v9 = vld [vmem:[%s2911_s17 + $0x8] sm:$0xff]  ;;  %v309_v12 = vld [vmem:[%s2911_s17 + $0x10] sm:$0xff]  ;;  %v527_v26 = vperm.slane %v2484_v25, 0  ;;  %v529_v27 = vperm.slane %v2484_v25, 2  ;;  %v528_v28 = vperm.slane %v2484_v25, 1 }
  0x11   : > { %v311_v8 = vld [vmem:[%s2911_s17 + $0x20] sm:$0xff]  ;;  %v312_v11 = vld [vmem:[%s2911_s17 + $0x28] sm:$0xff]  ;;  %v313_v13 = vld [vmem:[%s2911_s17 + $0x30] sm:$0xff]  ;;  %v530_v30 = vperm.slane %v2484_v25, 3  ;;  %s2825_s26 = smov 63   ;;  %s2826_s9 = smov 64  }
  0x12   : > { %v316_v10 = vpack.c.bf16 %v311_v8, %v307_v7  ;;  %v317_v15 = vpack.c.bf16 %v312_v11, %v308_v9  ;;  %v318_v16 = vpack.c.bf16 %v313_v13, %v309_v12  ;;  %v310_v17 = vld [vmem:[%s2911_s17 + $0x18] sm:$0xff]  ;;  %s2827_s14 = smov 65   ;;  %s2828_s18 = smov 71   ;;  %vm539_vm3 = vcmask 465920  }
  0x13   : > { %v314_v18 = vld [vmem:[%s2911_s17 + $0x38] sm:$0xff]  ;;  %s2829_s22 = smov 72   ;;  %s2830_s24 = smov 73   ;;  %vm601_vm4 = vcmask 515072   ;;  %vm663_vm5 = vcmask 523264   ;;  %vm630_vm6 = vcmask 531456  }
  0x14   : > { %337 = vmatpush.bf16.msra.mxu0 %v316_v10  ;;  %v319_v20 = vpack.c.bf16 %v314_v18, %v310_v17  ;;  %350 = vmatpush.bf16.msra.mxu1 %v317_v15  ;;  %v2485_v29 = vld [vmem:[%s4390_s7 + $0x3] ss:$8 sm:$0xf]  ;;  %v2486_v33 = vld [vmem:[%s4390_s7 + $0x4] ss:$8 sm:$0xf] }
  0x15   : > { %407 = vrot.lane.b32.xlu0 %v403_v6, %s2822_s11  ;;  %363 = vmatpush.bf16.msra.mxu2 %v318_v16  ;;  %v590_v31 = vperm.slane %v2485_v29, 1  ;;  %v589_v32 = vperm.slane %v2485_v29, 0  ;;  %v591_v34 = vperm.slane %v2485_v29, 2  ;;  %v651_v35 = vperm.slane %v2486_v33, 0  ;;  %s4403_s13 = smov 119   ;;  %s2832_s15 = smov 9  }
  0x16   : > { %376 = vmatpush.bf16.msra.mxu3 %v319_v20  ;;  %v592_v36 = vperm.slane %v2485_v29, 3  ;;  %v652_v37 = vperm.slane %v2486_v33, 1  ;;  %v654_v38 = vperm.slane %v2486_v33, 3  ;;  %v653_v39 = vperm.slane %v2486_v33, 2  ;;  %s4401_s21 = smov 120   ;;  %s2834_s25 = smov 8  }
  0x17   : > { %469 = vrot.lane.b32.xlu2 %v465_v14, %s2823_s20  ;;  %411 = vrot.lane.b32.xlu1 %v405_v19, %s2822_s11  ;;  %v2487_v40 = vld [vmem:[%s4390_s7 + $0x5] ss:$8 sm:$0xf]  ;;  %v2488_v44 = vld [vmem:[%s4390_s7 + $0x6] ss:$8 sm:$0xf] }
  0x18   : > { %2479 = vmatmul.msk.bf16.vlgmr.msra.gmra.mxu0 %vm326_vm0, %v315_v21  ;;  %2480 = vmatmul.msk.bf16.vlgmr.msra.gmra.mxu1 %vm326_vm0, %v315_v21  ;;  %v712_v41 = vperm.slane %v2487_v40, 0  ;;  %v714_v42 = vperm.slane %v2487_v40, 2  ;;  %v713_v43 = vperm.slane %v2487_v40, 1  ;;  %v715_v45 = vperm.slane %v2487_v40, 3  ;;  %s2835_s10 = smov 121   ;;  %s2836_s12 = smov 1  }
  0x19   : > { %2481 = vmatmul.msk.bf16.vlgmr.msra.gmra.mxu2 %vm326_vm0, %v315_v21  ;;  %2482 = vmatmul.msk.bf16.vlgmr.msra.gmra.mxu3 %vm326_vm0, %v315_v21  ;;  %v773_v46 = vperm.slane %v2488_v44, 1  ;;  %v772_v47 = vperm.slane %v2488_v44, 0  ;;  %v2489_v48 = vld [vmem:[%s4390_s7 + $0x7] ss:$8 sm:$0xf]  ;;  %v774_v49 = vperm.slane %v2488_v44, 2 }
  0x1a   : > { %v832_v50 = vperm.slane %v2489_v48, 0  ;;  %v775_v51 = vperm.slane %v2488_v44, 3  ;;  %v833_v52 = vperm.slane %v2489_v48, 1  ;;  %v835_v53 = vperm.slane %v2489_v48, 3  ;;  %s2837_s16 = smov 7   ;;  %s2838_s19 = smov 127  }
  0x1b   : > { %v834_v54 = vperm.slane %v2489_v48, 2  ;;  %vm568_vm7 = vcmask 580608   ;;  %vm506_vm8 = vcmask 588800   ;;  %vm444_vm9 = vcmask 596992  }
  0x1c   : > { %vm4424_vm10 = vcmask 973824   ;;  %vm993_vm11 = vcmask 72704   ;;  %vm4437_vm12 = vcmask 982016   ;;  %vm1055_vm13 = vcmask 64512  }
  0x1d   : > { %471 = vrot.lane.b32.xlu0 %v466_v22, %s2823_s20  ;;  %vm1088_vm14 = vcmask 990208   ;;  %vm1179_vm15 = vcmask 7168   ;;  %vm1117_vm0 = vcmask 56320  }
  0x1f   : > { %475 = vrot.lane.b32.xlu2 %v468_v23, %s2823_s20  ;;  %473 = vrot.lane.b32.xlu1 %v467_v24, %s2823_s20 }
  0x25   : > { %531 = vrot.lane.b32.xlu0 %v527_v26, %s2824_s23 }
  0x27   : > { %535 = vrot.lane.b32.xlu2 %v529_v27, %s2824_s23  ;;  %533 = vrot.lane.b32.xlu1 %v528_v28, %s2824_s23 }
  0x2d   : > { %537 = vrot.lane.b32.xlu0 %v530_v30, %s2824_s23 }
  0x2f   : > { %595 = vrot.lane.b32.xlu2 %v590_v31, %s2825_s26  ;;  %593 = vrot.lane.b32.xlu1 %v589_v32, %s2825_s26 }
  0x35   : > { %597 = vrot.lane.b32.xlu0 %v591_v34, %s2825_s26 }
  0x37   : > { %655 = vrot.lane.b32.xlu2 %v651_v35, %s2826_s9  ;;  %599 = vrot.lane.b32.xlu1 %v592_v36, %s2825_s26 }
  0x3d   : > { %657 = vrot.lane.b32.xlu0 %v652_v37, %s2826_s9 }
  0x3f   : > { %661 = vrot.lane.b32.xlu2 %v654_v38, %s2826_s9  ;;  %659 = vrot.lane.b32.xlu1 %v653_v39, %s2826_s9 }
  0x45   : > { %716 = vrot.lane.b32.xlu0 %v712_v41, %s2827_s14 }
  0x47   : > { %720 = vrot.lane.b32.xlu2 %v714_v42, %s2827_s14  ;;  %718 = vrot.lane.b32.xlu1 %v713_v43, %s2827_s14 }
  0x4d   : > { %722 = vrot.lane.b32.xlu0 %v715_v45, %s2827_s14 }
  0x4f   : > { %778 = vrot.lane.b32.xlu2 %v773_v46, %s2828_s18  ;;  %776 = vrot.lane.b32.xlu1 %v772_v47, %s2828_s18 }
  0x55   : > { %780 = vrot.lane.b32.xlu0 %v774_v49, %s2828_s18 }
  0x57   : > { %836 = vrot.lane.b32.xlu2 %v832_v50, %s2829_s22  ;;  %782 = vrot.lane.b32.xlu1 %v775_v51, %s2828_s18 }
  0x5d   : > { %838 = vrot.lane.b32.xlu0 %v833_v52, %s2829_s22 }
  0x5f   : > { %842 = vrot.lane.b32.xlu2 %v835_v53, %s2829_s22  ;;  %840 = vrot.lane.b32.xlu1 %v834_v54, %s2829_s22 }
  0x69   : > { %v2972_v55 = vpop.permute.xlu2 %413 }
  0x71   : > { %v470_v56 = vpop.permute.xlu2 %469 }
  0x72   : > { %v486_v8 = vmul.f32 0.0, %v470_v56 }
  0x79   : > { %v2978_v59 = vpop.permute.xlu2 %475 }
  0x7f   : > { %v2974_v57 = vpop.permute.xlu0 %323 }
  0x81   : > { %v2976_v58 = vpop.permute.xlu1 %409  ;;  %v2984_v63 = vpop.permute.xlu2 %535 }
  0x87   : > { %v408_v60 = vpop.permute.xlu0 %407 }
  0x88   : > { %v416_v6 = vsel %vm415_vm1, %v408_v60, %v2976_v58  ;;  %v424_v9 = vmul.f32 0.0, %v408_v60 }
  0x89   : > { %v2980_v61 = vpop.permute.xlu1 %411  ;;  %v2997_v10 = vpop.permute.xlu2 %595 }
  0x8f   : > { %v2982_v62 = vpop.permute.xlu0 %471 }
  0x90   : > { %v478_v7 = vsel %vm477_vm2, %v470_v56, %v2982_v62 }
  0x91   : > { %v2986_v0 = vpop.permute.xlu1 %473  ;;  %v656_v28 = vpop.permute.xlu2 %655 }
  0x92   : > { %v672_v36 = vmul.f32 0.0, %v656_v28 }
  0x95   : > { %v339_v1 = vpop.f32.mrf.mxu0  ;;  %v2989_v3 = vpop.f32.mrf.mxu1 }
  0x96   : > { %v340_v2 = vadd.f32 %v339_v1, %v2974_v57  ;;  %v353_v1 = vadd.f32 %v2989_v3, %v2974_v57 }
  0x97   : > { %v532_v4 = vpop.permute.xlu0 %531 }
  0x98   : > { %v2991_v5 = vmax.f32 %v340_v2, 0.0  ;;  %v548_v15 = vmul.f32 0.0, %v532_v4 }
  0x99   : > { %v2999_v11 = vpop.permute.xlu1 %533  ;;  %v3019_v35 = vpop.permute.xlu2 %661 }
  0x9a   : > { %v487_v12 = vmul.f32 %v478_v7, %v2991_v5  ;;  %v425_v13 = vmul.f32 %v416_v6, %v2991_v5  ;;  %v540_v14 = vsel %vm539_vm3, %v532_v4, %v2999_v11 }
  0x9b   : > { %v549_v16 = vmul.f32 %v540_v14, %v2991_v5 }
  0x9c   : > { %v365_v17 = vpop.f32.mrf.mxu2  ;;  %v2558_v18 = vpack.i.bf16 %v487_v12, %v486_v8  ;;  %v2553_v19 = vpack.i.bf16 %v425_v13, %v424_v9  ;;  %v378_v20 = vpop.f32.mrf.mxu3  ;;  %v3051_v9 = vmax.f32 %v353_v1, 0.0  ;;  %v479_v12 = vsel %vm477_vm2, %v2982_v62, %v2986_v0 }
  0x9d   : > { %v341_v21 = vpop.f32.mrf.mxu0  ;;  %v2563_v22 = vpack.i.bf16 %v549_v16, %v548_v15  ;;  %v354_v23 = vpop.f32.mrf.mxu1  ;;  %v379_v48 = vadd.f32 %v378_v20, %v2974_v57  ;;  %v366_v51 = vadd.f32 %v365_v17, %v2974_v57  ;;  %v480_v57 = vsel %vm477_vm2, %v2986_v0, %v2978_v59 }
  0x9e   : > { %2559 = vrot.lane.b32.xlu0 %v2558_v18, %s2829_s22  ;;  %2554 = vrot.lane.b32.xlu2 %v2553_v19, %s2830_s24  ;;  %v488_v13 = vmul.f32 %v479_v12, %v3051_v9  ;;  %v541_v0 = vsel %vm539_vm3, %v2999_v11, %v2984_v63  ;;  %v418_v23 = vsel %vm415_vm1, %v2980_v61, %v2972_v55 }
  0x9f   : > { %v3008_v24 = vpop.permute.xlu0 %537  ;;  %2564 = vrot.lane.b32.xlu1 %v2563_v22, %s2828_s18  ;;  %v3036_v52 = vmax.f32 %v379_v48, 0.0  ;;  %v3045_v4 = vmax.f32 %v366_v51, 0.0  ;;  %v550_v22 = vmul.f32 %v541_v0, %v3051_v9 }
  0xa0   : > { %v542_v17 = vsel %vm539_vm3, %v2984_v63, %v3008_v24 }
  0xa1   : > { %v594_v25 = vpop.permute.xlu1 %593  ;;  %v3024_v43 = vpop.permute.xlu2 %720  ;;  %v428_v6 = vmul.f32 %v2972_v55, %v3036_v52  ;;  %v489_v3 = vmul.f32 %v480_v57, %v3045_v4  ;;  %v490_v16 = vmul.f32 %v2978_v59, %v3036_v52  ;;  %v551_v59 = vmul.f32 %v542_v17, %v3045_v4 }
  0xa2   : > { %v602_v26 = vsel %vm601_vm4, %v594_v25, %v2997_v10  ;;  %v610_v27 = vmul.f32 0.0, %v594_v25  ;;  %v427_v11 = vmul.f32 %v418_v23, %v3045_v4 }
  0xa3   : > { %v611_v29 = vmul.f32 %v602_v26, %v2991_v5  ;;  %v2598_v15 = vpack.i.bf16 %v489_v3, %v488_v13  ;;  %v2603_v26 = vpack.i.bf16 %v551_v59, %v550_v22 }
  0xa4   : > { %v367_v30 = vpop.f32.mrf.mxu2  ;;  %v380_v31 = vpop.f32.mrf.mxu3 }
  0xa5   : > { %v2568_v32 = vpack.i.bf16 %v611_v29, %v610_v27 }
  0xa7   : > { %v3014_v33 = vpop.permute.xlu0 %597  ;;  %2569 = vrot.lane.b32.xlu2 %v2568_v32, %s2827_s14 }
  0xa9   : > { %v3017_v34 = vpop.permute.xlu1 %599  ;;  %v3038_v53 = vpop.permute.xlu2 %778 }
  0xaa   : > { %v614_v25 = vmul.f32 %v3017_v34, %v3036_v52 }
  0xaf   : > { %v658_v37 = vpop.permute.xlu0 %657 }
  0xb0   : > { %v664_v38 = vsel %vm663_vm5, %v656_v28, %v658_v37  ;;  %v417_v28 = vsel %vm415_vm1, %v2976_v58, %v2980_v61 }
  0xb1   : > { %v673_v39 = vmul.f32 %v664_v38, %v2991_v5  ;;  %v660_v40 = vpop.permute.xlu1 %659  ;;  %v837_v14 = vpop.permute.xlu2 %836  ;;  %v426_v55 = vmul.f32 %v417_v28, %v3051_v9 }
  0xb2   : > { %v852_v18 = vmul.f32 0.0, %v837_v14  ;;  %v665_v27 = vsel %vm663_vm5, %v658_v37, %v660_v40  ;;  %v666_v63 = vsel %vm663_vm5, %v660_v40, %v3019_v35  ;;  %v676_v37 = vmul.f32 %v3019_v35, %v3036_v52 }
  0xb3   : > { %v2573_v41 = vpack.i.bf16 %v673_v39, %v672_v36  ;;  %v674_v29 = vmul.f32 %v665_v27, %v3051_v9  ;;  %v675_v30 = vmul.f32 %v666_v63, %v3045_v4  ;;  %v2593_v32 = vpack.i.bf16 %v427_v11, %v426_v55 }
  0xb4   : > { %v552_v39 = vmul.f32 %v3008_v24, %v3036_v52  ;;  %v603_v35 = vsel %vm601_vm4, %v2997_v10, %v3014_v33  ;;  %v604_v40 = vsel %vm601_vm4, %v3014_v33, %v3017_v34 }
  0xb5   : > { %2574 = vrot.lane.b32.xlu0 %v2573_v41, %s2826_s9  ;;  %v2613_v36 = vpack.i.bf16 %v675_v30, %v674_v29  ;;  %v613_v24 = vmul.f32 %v604_v40, %v3045_v4 }
  0xb7   : > { %v717_v42 = vpop.permute.xlu0 %716 }
  0xb8   : > { %v732_v46 = vmul.f32 0.0, %v717_v42 }
  0xb9   : > { %v3026_v44 = vpop.permute.xlu1 %718 }
  0xba   : > { %v724_v45 = vsel %vm630_vm6, %v717_v42, %v3026_v44  ;;  %v725_v61 = vsel %vm630_vm6, %v3026_v44, %v3024_v43 }
  0xbb   : > { %v733_v47 = vmul.f32 %v724_v45, %v2991_v5  ;;  %v734_v41 = vmul.f32 %v725_v61, %v3051_v9  ;;  %v843_v45 = vpop.permute.xlu2 %842 }
  0xbd   : > { %v2578_v49 = vpack.i.bf16 %v733_v47, %v732_v46  ;;  %v612_v46 = vmul.f32 %v603_v35, %v3051_v9 }
  0xbf   : > { %v3032_v50 = vpop.permute.xlu0 %722  ;;  %2579 = vrot.lane.b32.xlu1 %v2578_v49, %s2825_s26  ;;  %v2608_v48 = vpack.i.bf16 %v613_v24, %v612_v46  ;;  %v856_v49 = vmul.f32 %v843_v45, %v3036_v52 }
  0xc0   : > { %v726_v58 = vsel %vm630_vm6, %v3024_v43, %v3032_v50 }
  0xc1   : > { %v777_v54 = vpop.permute.xlu1 %776  ;;  %v735_v38 = vmul.f32 %v726_v58, %v3045_v4 }
  0xc2   : > { %v784_v56 = vsel %vm568_vm7, %v777_v54, %v3038_v53  ;;  %v792_v60 = vmul.f32 0.0, %v777_v54  ;;  %v2490_v54 = vld [vmem:[%s4390_s7 + $0x20] ss:$8 sm:$0xf] }
  0xc3   : > { %v793_v2 = vmul.f32 %v784_v56, %v2991_v5  ;;  %v2618_v44 = vpack.i.bf16 %v735_v38, %v734_v41  ;;  %v736_v56 = vmul.f32 %v3032_v50, %v3036_v52  ;;  %v892_v3 = vperm.slane %v2490_v54, 0 }
  0xc5   : > { %v2583_v7 = vpack.i.bf16 %v793_v2, %v792_v60  ;;  %v893_v2 = vperm.slane %v2490_v54, 1 }
  0xc7   : > { %v3049_v8 = vpop.permute.xlu0 %780  ;;  %442 = vrot.lane.b32.xlu1 %v428_v6, %s2830_s24  ;;  %2584 = vrot.lane.b32.xlu2 %v2583_v7, %s2824_s23  ;;  %v894_v6 = vperm.slane %v2490_v54, 2 }
  0xc8   : > { %v785_v60 = vsel %vm568_vm7, %v3038_v53, %v3049_v8  ;;  %v895_v53 = vperm.slane %v2490_v54, 3 }
  0xc9   : > { %v783_v31 = vpop.permute.xlu1 %782  ;;  %v794_v7 = vmul.f32 %v785_v60, %v3051_v9 }
  0xca   : > { %v796_v43 = vmul.f32 %v783_v31, %v3036_v52  ;;  %v786_v1 = vsel %vm568_vm7, %v3049_v8, %v783_v31 }
  0xcb   : > { %v795_v57 = vmul.f32 %v786_v1, %v3045_v4 }
  0xcd   : > { %v2623_v50 = vpack.i.bf16 %v795_v57, %v794_v7 }
  0xcf   : > { %v839_v19 = vpop.permute.xlu0 %838  ;;  %2599 = vrot.lane.b32.xlu1 %v2598_v15, %s2829_s22  ;;  %504 = vrot.lane.b32.xlu2 %v490_v16, %s2829_s22 }
  0xd0   : > { %v844_v62 = vsel %vm506_vm8, %v837_v14, %v839_v19 }
  0xd1   : > { %v853_v20 = vmul.f32 %v844_v62, %v2991_v5  ;;  %v841_v42 = vpop.permute.xlu1 %840 }
  0xd2   : > { %v845_v47 = vsel %vm506_vm8, %v839_v19, %v841_v42  ;;  %v846_v10 = vsel %vm506_vm8, %v841_v42, %v843_v45 }
  0xd3   : > { %v2588_v21 = vpack.i.bf16 %v853_v20, %v852_v18  ;;  %v854_v33 = vmul.f32 %v845_v47, %v3051_v9  ;;  %v855_v34 = vmul.f32 %v846_v10, %v3045_v4 }
  0xd5   : > { %2589 = vrot.lane.b32.xlu0 %v2588_v21, %s2823_s20  ;;  %v2628_v51 = vpack.i.bf16 %v855_v34, %v854_v33 }
  0xd7   : > { %628 = vrot.lane.b32.xlu1 %v614_v25, %s2827_s14  ;;  %2604 = vrot.lane.b32.xlu2 %v2603_v26, %s2828_s18 }
  0xdd   : > { %2594 = vrot.lane.b32.xlu0 %v2593_v32, %s2830_s24 }
  0xdf   : > { %2614 = vrot.lane.b32.xlu1 %v2613_v36, %s2826_s9  ;;  %690 = vrot.lane.b32.xlu2 %v676_v37, %s2826_s9 }
  0xe5   : > { %566 = vrot.lane.b32.xlu0 %v552_v39, %s2828_s18 }
  0xe7   : > { %810 = vrot.lane.b32.xlu1 %v796_v43, %s2824_s23  ;;  %2619 = vrot.lane.b32.xlu2 %v2618_v44, %s2825_s26 }
  0xed   : > { %2609 = vrot.lane.b32.xlu0 %v2608_v48, %s2827_s14 }
  0xef   : > { %2629 = vrot.lane.b32.xlu1 %v2628_v51, %s2823_s20  ;;  %870 = vrot.lane.b32.xlu2 %v856_v49, %s2823_s20 }
  0xf5   : > { %750 = vrot.lane.b32.xlu0 %v736_v56, %s2825_s26 }
  0xf7   : > { %898 = vrot.lane.b32.xlu1 %v893_v2, %s2830_s24  ;;  %900 = vrot.lane.b32.xlu2 %v894_v6, %s2830_s24 }
  0xf8   : > { %v3148_v8 = vpop.permute.xlu2 %2554 }
  0xf9   : > { %4440 = vst [vmem:[#allocation4_spill] sm:$0xff] %v3148_v8  ;;  %v4392_v32 = vunpack.i.h.bf16 %v3148_v8 }
  0xfd   : > { %2624 = vrot.lane.b32.xlu0 %v2623_v50, %s2824_s23 }
 0x101   : > { %v3150_v12 = vpop.permute.xlu2 %2569 }
 0x102   : > { %4441 = vst [vmem:[#allocation5_spill] sm:$0xff] %v3150_v12  ;;  %v4395_v1 = vunpack.i.h.bf16 %v3150_v12 }
 0x105   : > { %896 = vrot.lane.b32.xlu0 %v892_v3, %s2830_s24 }
 0x10d   : > { %902 = vrot.lane.b32.xlu0 %v895_v53, %s2830_s24 }
 0x110   : > { %v3161_v0 = vpop.permute.xlu0 %2559 }
 0x111   : > { %v3154_v14 = vpop.permute.xlu1 %2564  ;;  %4444 = vst [vmem:[#allocation8_spill] sm:$0xff] %v3161_v0  ;;  %v4393_v36 = vunpack.i.h.bf16 %v3161_v0 }
 0x112   : > { %4442 = vst [vmem:[#allocation6_spill] sm:$0xff] %v3154_v14  ;;  %v4396_v2 = vunpack.i.h.bf16 %v3154_v14 }
 0x121   : > { %v3152_v13 = vpop.permute.xlu2 %2584 }
 0x127   : > { %v3163_v21 = vpop.permute.xlu0 %2574 }
 0x128   : > { %4445 = vst [vmem:[#allocation9_spill] sm:$0xff] %v3163_v21  ;;  %v4397_v61 = vunpack.i.h.bf16 %v3163_v21 }
 0x129   : > { %v505_v15 = vpop.permute.xlu2 %504 }
 0x131   : > { %v3156_v16 = vpop.permute.xlu1 %2579  ;;  %v2605_v17 = vpop.permute.xlu2 %2604 }
 0x132   : > { %v2607_v18 = vunpack.i.h.bf16 %v2605_v17  ;;  %v2606_v19 = vunpack.i.l.bf16 %v2605_v17  ;;  %v4398_v38 = vunpack.i.h.bf16 %v3156_v16 }
 0x134   : > { %v3159_v62 = vsel %vm568_vm7, %v2606_v19, %v2607_v18  ;;  %v3230_v50 = vsel %vm568_vm7, %v4396_v2, %v2606_v19  ;;  %v3360_v2 = vld [vmem:[%s4390_s7 + $0x27] ss:$8 sm:$0xf] }
 0x135   : > { %4443 = vst [vmem:[#allocation7_spill] sm:$0xff] %v3159_v62 }
 0x139   : > { %v443_v20 = vpop.permute.xlu1 %442  ;;  %v691_v59 = vpop.permute.xlu2 %690 }
 0x141   : > { %v2600_v22 = vpop.permute.xlu1 %2599  ;;  %v2620_v23 = vpop.permute.xlu2 %2619 }
 0x142   : > { %v2602_v25 = vunpack.i.h.bf16 %v2600_v22  ;;  %v2601_v26 = vunpack.i.l.bf16 %v2600_v22  ;;  %v2622_v27 = vunpack.i.h.bf16 %v2620_v23  ;;  %v2621_v63 = vunpack.i.l.bf16 %v2620_v23 }
 0x144   : > { %v3166_v11 = vsel %vm506_vm8, %v2602_v25, %v505_v15  ;;  %v3169_v28 = vsel %vm601_vm4, %v2621_v63, %v2622_v27  ;;  %v3172_v55 = vsel %vm506_vm8, %v2601_v26, %v2602_v25  ;;  %v3188_v40 = vsel %vm506_vm8, %v4393_v36, %v2601_v26 }
 0x145   : > { %4446 = vst [vmem:[#allocation10_spill] sm:$0xff] %v3166_v11  ;;  %v3213_v33 = vsel %vm601_vm4, %v4398_v38, %v2621_v63 }
 0x146   : > { %4447 = vst [vmem:[#allocation11_spill] sm:$0xff] %v3169_v28 }
 0x147   : > { %4448 = vst [vmem:[#allocation12_spill] sm:$0xff] %v3172_v55  ;;  %v3174_v29 = vpop.permute.xlu0 %2589 }
 0x149   : > { %v629_v30 = vpop.permute.xlu1 %628 }
 0x14f   : > { %v2595_v31 = vpop.permute.xlu0 %2594 }
 0x150   : > { %v2597_v37 = vunpack.i.h.bf16 %v2595_v31  ;;  %v2596_v58 = vunpack.i.l.bf16 %v2595_v31 }
 0x151   : > { %v2615_v39 = vpop.permute.xlu1 %2614 }
 0x152   : > { %v3183_v35 = vsel %vm444_vm9, %v4392_v32, %v2596_v58  ;;  %v3191_v41 = vsel %vm444_vm9, %v2597_v37, %v443_v20  ;;  %v3194_v42 = vsel %vm444_vm9, %v2596_v58, %v2597_v37  ;;  %v2617_v45 = vunpack.i.h.bf16 %v2615_v39 }
 0x153   : > { %4449 = vst [vmem:[#allocation13_spill] sm:$0xff] %v3191_v41  ;;  %v2616_v43 = vunpack.i.l.bf16 %v2615_v39  ;;  %v4399_v37 = vunpack.i.h.bf16 %v3152_v13  ;;  %v4400_v58 = vunpack.i.h.bf16 %v3174_v29 }
 0x154   : > { %4450 = vst [vmem:[#allocation14_spill] sm:$0xff] %v3194_v42  ;;  %v3203_v47 = vsel %vm663_vm5, %v2617_v45, %v691_v59  ;;  %v871_v59 = vpop.permute.xlu2 %870 }
 0x155   : > { %4451 = vst [vmem:[#allocation15_spill] sm:$0xff] %v3203_v47  ;;  %v3208_v10 = vsel %vm663_vm5, %v4397_v61, %v2616_v43  ;;  %v3216_v34 = vsel %vm663_vm5, %v2616_v43, %v2617_v45 }
 0x156   : > { %4452 = vst [vmem:[#allocation16_spill] sm:$0xff] %v3216_v34 }
 0x157   : > { %v567_v51 = vpop.permute.xlu0 %566 }
 0x158   : > { %v3223_v54 = vsel %vm568_vm7, %v2607_v18, %v567_v51 }
 0x159   : > { %4453 = vst [vmem:[#allocation17_spill] sm:$0xff] %v3223_v54  ;;  %v811_v56 = vpop.permute.xlu1 %810 }
 0x15f   : > { %v2610_v60 = vpop.permute.xlu0 %2609 }
 0x160   : > { %v2612_v6 = vunpack.i.h.bf16 %v2610_v60  ;;  %v2611_v7 = vunpack.i.l.bf16 %v2610_v60 }
 0x161   : > { %v2630_v57 = vpop.permute.xlu1 %2629 }
 0x162   : > { %v3235_v3 = vsel %vm630_vm6, %v4395_v1, %v2611_v7  ;;  %v3238_v53 = vsel %vm630_vm6, %v2612_v6, %v629_v30  ;;  %v3241_v15 = vsel %vm630_vm6, %v2611_v7, %v2612_v6  ;;  %v2632_v17 = vunpack.i.h.bf16 %v2630_v57 }
 0x163   : > { %4454 = vst [vmem:[#allocation18_spill] sm:$0xff] %v3238_v53  ;;  %v2631_v18 = vunpack.i.l.bf16 %v2630_v57 }
 0x164   : > { %4455 = vst [vmem:[#allocation19_spill] sm:$0xff] %v3241_v15  ;;  %v3250_v23 = vsel %vm477_vm2, %v2632_v17, %v871_v59 }
 0x165   : > { %4456 = vst [vmem:[#allocation20_spill] sm:$0xff] %v3250_v23  ;;  %v3253_v25 = vsel %vm477_vm2, %v2631_v18, %v2632_v17 }
 0x166   : > { %4457 = vst [vmem:[#allocation21_spill] sm:$0xff] %v3253_v25 }
 0x167   : > { %v751_v26 = vpop.permute.xlu0 %750 }
 0x168   : > { %v3256_v63 = vsel %vm601_vm4, %v2622_v27, %v751_v26  ;;  %v3270_v27 = vsel %vm477_vm2, %v4400_v58, %v2631_v18 }
 0x169   : > { %4458 = vst [vmem:[#allocation22_spill] sm:$0xff] %v3256_v63  ;;  %v899_v17 = vpop.permute.xlu1 %898 }
 0x16f   : > { %v2625_v31 = vpop.permute.xlu0 %2624 }
 0x170   : > { %v2627_v39 = vunpack.i.h.bf16 %v2625_v31  ;;  %v2626_v45 = vunpack.i.l.bf16 %v2625_v31  ;;  %v901_v31 = vpop.permute.xlu2 %900 }
 0x172   : > { %v3265_v43 = vsel %vm539_vm3, %v4399_v37, %v2626_v45  ;;  %v3273_v51 = vsel %vm539_vm3, %v2627_v39, %v811_v56  ;;  %v3276_v60 = vsel %vm539_vm3, %v2626_v45, %v2627_v39  ;;  %v905_v39 = vsel %vm444_vm9, %v899_v17, %v901_v31  ;;  %v2491_v45 = vld [vmem:[%s4390_s7 + $0x21] ss:$8 sm:$0xf] }
 0x173   : > { %4459 = vst [vmem:[#allocation23_spill] sm:$0xff] %v3273_v51  ;;  %v914_v57 = vmul.f32 %v905_v39, %v3051_v9 }
 0x174   : > { %4460 = vst [vmem:[#allocation24_spill] sm:$0xff] %v3276_v60 }
 0x177   : > { %v897_v59 = vpop.permute.xlu0 %896 }
 0x178   : > { %v904_v18 = vsel %vm444_vm9, %v897_v59, %v899_v17  ;;  %v912_v26 = vmul.f32 0.0, %v897_v59  ;;  %v955_v17 = vperm.slane %v2491_v45, 3 }
 0x179   : > { %v913_v56 = vmul.f32 %v904_v18, %v2991_v5  ;;  %v952_v18 = vperm.slane %v2491_v45, 0 }
 0x17b   : > { %v2633_v24 = vpack.i.bf16 %v913_v56, %v912_v26  ;;  %v953_v56 = vperm.slane %v2491_v45, 1 }
 0x17d   : > { %2634 = vrot.lane.b32.xlu1 %v2633_v24, %s2822_s11  ;;  %v954_v24 = vperm.slane %v2491_v45, 2 }
 0x17f   : > { %v903_v22 = vpop.permute.xlu0 %902 }
 0x180   : > { %v906_v49 = vsel %vm444_vm9, %v901_v31, %v903_v22  ;;  %v916_v46 = vmul.f32 %v903_v22, %v3036_v52 }
 0x181   : > { %v915_v59 = vmul.f32 %v906_v49, %v3045_v4 }
 0x182   : > { %930 = vrot.lane.b32.xlu0 %v916_v46, %s2822_s11 }
 0x183   : > { %v2638_v26 = vpack.i.bf16 %v915_v59, %v914_v57 }
 0x185   : > { %956 = vrot.lane.b32.xlu1 %v952_v18, %s4403_s13  ;;  %2639 = vrot.lane.b32.xlu2 %v2638_v26, %s2822_s11 }
 0x18a   : > { %960 = vrot.lane.b32.xlu0 %v954_v24, %s4403_s13 }
 0x18d   : > { %962 = vrot.lane.b32.xlu1 %v955_v17, %s4403_s13  ;;  %958 = vrot.lane.b32.xlu2 %v953_v56, %s4403_s13 }
 0x1df   : > { %v2640_v22 = vpop.permute.xlu2 %2639 }
 0x1e0   : > { %v2642_v49 = vunpack.i.h.bf16 %v2640_v22  ;;  %v2641_v31 = vunpack.i.l.bf16 %v2640_v22 }
 0x1e2   : > { %v3302_v46 = vsel %vm415_vm1, %v2641_v31, %v2642_v49 }
 0x1e3   : > { %4461 = vst [vmem:[#allocation25_spill] sm:$0xff] %v3302_v46 }
 0x1e7   : > { %v959_v26 = vpop.permute.xlu2 %958 }
 0x1ef   : > { %v2635_v57 = vpop.permute.xlu1 %2634 }
 0x1f0   : > { %v2637_v39 = vunpack.i.h.bf16 %v2635_v57 }
 0x1f2   : > { %v3305_v59 = vsel %vm415_vm1, %v2637_v39, %v2641_v31 }
 0x1f4   : > { %v931_v18 = vpop.permute.xlu0 %930 }
 0x1f5   : > { %v3308_v45 = vsel %vm415_vm1, %v2642_v49, %v931_v18  ;;  %v2492_v49 = vld [vmem:[%s4390_s7 + $0x22] ss:$8 sm:$0xf] }
 0x1f6   : > { %4462 = vst [vmem:[#allocation26_spill] sm:$0xff] %v3308_v45  ;;  %v1017_v36 = vperm.slane %v2492_v49, 3 }
 0x1f7   : > { %v957_v24 = vpop.permute.xlu1 %956 }
 0x1f8   : > { %v973_v17 = vmul.f32 0.0, %v957_v24  ;;  %v965_v56 = vsel %vm4424_vm10, %v957_v24, %v959_v26 }
 0x1f9   : > { %v974_v22 = vmul.f32 %v965_v56, %v2991_v5 }
 0x1fb   : > { %v2643_v19 = vpack.i.bf16 %v974_v22, %v973_v17  ;;  %v1014_v17 = vperm.slane %v2492_v49, 0 }
 0x1fc   : > { %v961_v30 = vpop.permute.xlu0 %960 }
 0x1fd   : > { %2644 = vrot.lane.b32.xlu2 %v2643_v19, %s2832_s15  ;;  %v966_v31 = vsel %vm4424_vm10, %v959_v26, %v961_v30  ;;  %v1016_v19 = vperm.slane %v2492_v49, 2  ;;  %v1015_v26 = vperm.slane %v2492_v49, 1 }
 0x1fe   : > { %v975_v24 = vmul.f32 %v966_v31, %v3051_v9 }
 0x1ff   : > { %v963_v18 = vpop.permute.xlu1 %962 }
 0x200   : > { %v967_v7 = vsel %vm4424_vm10, %v961_v30, %v963_v18  ;;  %v977_v32 = vmul.f32 %v963_v18, %v3036_v52  ;;  %v2636_v30 = vunpack.i.l.bf16 %v2635_v57  ;;  %vm1150_vm10 = vcmask 1039360  }
 0x201   : > { %v976_v56 = vmul.f32 %v967_v7, %v3045_v4 }
 0x202   : > { %991 = vrot.lane.b32.xlu1 %v977_v32, %s2832_s15  ;;  %v3328_v18 = vsel %vm415_vm1, %v2636_v30, %v2637_v39  ;;  %v3344_v39 = vld [vmem:[%s4390_s7 + $0x26] ss:$8 sm:$0xf] }
 0x203   : > { %v2648_v22 = vpack.i.bf16 %v976_v56, %v975_v24  ;;  %v1226_v48 = vperm.slane %v3344_v39, 3 }
 0x205   : > { %2649 = vrot.lane.b32.xlu0 %v2648_v22, %s2832_s15  ;;  %1018 = vrot.lane.b32.xlu2 %v1014_v17, %s4401_s21 }
 0x20a   : > { %1022 = vrot.lane.b32.xlu1 %v1016_v19, %s4401_s21 }
 0x20d   : > { %1020 = vrot.lane.b32.xlu0 %v1015_v26, %s4401_s21  ;;  %1024 = vrot.lane.b32.xlu2 %v1017_v36, %s4401_s21  ;;  %v2493_v36 = vld [vmem:[%s4390_s7 + $0x23] ss:$8 sm:$0xf]  ;;  %v1224_v26 = vperm.slane %v3344_v39, 1 }
 0x20e   : > { %v1078_v57 = vperm.slane %v2493_v36, 2 }
 0x257   : > { %v2645_v7 = vpop.permute.xlu2 %2644 }
 0x258   : > { %v2647_v31 = vunpack.i.h.bf16 %v2645_v7  ;;  %v2646_v32 = vunpack.i.l.bf16 %v2645_v7 }
 0x25a   : > { %v3331_v24 = vsel %vm993_vm11, %v2646_v32, %v2647_v31 }
 0x25f   : > { %v1019_v56 = vpop.permute.xlu2 %1018 }
 0x260   : > { %v1035_v44 = vmul.f32 0.0, %v1019_v56 }
 0x267   : > { %v1025_v17 = vpop.permute.xlu2 %1024 }
 0x268   : > { %v1039_v22 = vmul.f32 %v1025_v17, %v3036_v52 }
 0x26a   : > { %1053 = vrot.lane.b32.xlu2 %v1039_v22, %s2834_s25 }
 0x272   : > { %1084 = vrot.lane.b32.xlu2 %v1078_v57, %s2835_s10 }
 0x274   : > { %v992_v19 = vpop.permute.xlu1 %991 }
 0x277   : > { %v2650_v30 = vpop.permute.xlu0 %2649 }
 0x278   : > { %v2652_v7 = vunpack.i.h.bf16 %v2650_v30  ;;  %v2651_v32 = vunpack.i.l.bf16 %v2650_v30 }
 0x27a   : > { %1229 = vrot.lane.b32.xlu2 %v1224_v26, %s2836_s12  ;;  %v3349_v22 = vsel %vm993_vm11, %v2647_v31, %v2651_v32  ;;  %v3352_v1 = vsel %vm993_vm11, %v2652_v7, %v992_v19  ;;  %v3355_v57 = vsel %vm993_vm11, %v2651_v32, %v2652_v7  ;;  %v1284_v7 = vperm.slane %v3360_v2, 1 }
 0x27b   : > { %4463 = vst [vmem:[#allocation27_spill] sm:$0xff] %v3352_v1 }
 0x27c   : > { %4464 = vst [vmem:[#allocation28_spill] sm:$0xff] %v3355_v57  ;;  %v1023_v19 = vpop.permute.xlu1 %1022 }
 0x27d   : > { %v1029_v61 = vsel %vm4437_vm12, %v1023_v19, %v1025_v17  ;;  %v3379_v17 = vld [vmem:[%s4390_s7 + $0x62] ss:$8 sm:$0xf] }
 0x27e   : > { %v1038_v49 = vmul.f32 %v1029_v61, %v3045_v4  ;;  %v1944_v61 = vperm.slane %v3379_v17, 1 }
 0x27f   : > { %v1021_v32 = vpop.permute.xlu0 %1020 }
 0x280   : > { %v1027_v38 = vsel %vm4437_vm12, %v1019_v56, %v1021_v32  ;;  %v1028_v37 = vsel %vm4437_vm12, %v1021_v32, %v1023_v19  ;;  %v1076_v56 = vperm.slane %v2493_v36, 0  ;;  %v3409_v19 = vld [vmem:[%s4390_s7 + $0x61] ss:$8 sm:$0xf]  ;;  %v1285_v32 = vperm.slane %v3360_v2, 2 }
 0x281   : > { %v1036_v58 = vmul.f32 %v1027_v38, %v2991_v5  ;;  %v1037_v26 = vmul.f32 %v1028_v37, %v3051_v9  ;;  %v1077_v38 = vperm.slane %v2493_v36, 1  ;;  %vm2176_vm12 = vcmask 1043456  }
 0x282   : > { %1289 = vrot.lane.b32.xlu2 %v1284_v7, %s2837_s16  ;;  %v1884_v7 = vperm.slane %v3409_v19, 1 }
 0x283   : > { %v2653_v31 = vpack.i.bf16 %v1036_v58, %v1035_v44  ;;  %v2658_v20 = vpack.i.bf16 %v1038_v49, %v1037_v26  ;;  %v3388_v44 = vld [vmem:[%s4390_s7 + $0x24] ss:$8 sm:$0xf]  ;;  %v1079_v58 = vperm.slane %v2493_v36, 3  ;;  %v1283_v36 = vperm.slane %v3360_v2, 0 }
 0x284   : > { %v1139_v37 = vperm.slane %v3388_v44, 1  ;;  %v3398_v49 = vld [vmem:[%s4390_s7 + $0x60] ss:$8 sm:$0xf]  ;;  %v1141_v62 = vperm.slane %v3388_v44, 3 }
 0x285   : > { %2654 = vrot.lane.b32.xlu0 %v2653_v31, %s2834_s25  ;;  %2659 = vrot.lane.b32.xlu1 %v2658_v20, %s2834_s25  ;;  %v1223_v20 = vperm.slane %v3344_v39, 0  ;;  %v1824_v26 = vperm.slane %v3398_v49, 1  ;;  %v1225_v31 = vperm.slane %v3344_v39, 2  ;;  %v3496_v39 = vld [vmem:[%s4390_s7 + $0x40] ss:$8 sm:$0xf] }
 0x286   : > { %v1346_v57 = vperm.slane %v3496_v39, 3 }
 0x28a   : > { %1949 = vrot.lane.b32.xlu2 %v1944_v61, %s2830_s24  ;;  %v1943_v61 = vperm.slane %v3379_v17, 0 }
 0x28d   : > { %1080 = vrot.lane.b32.xlu0 %v1076_v56, %s2835_s10  ;;  %1082 = vrot.lane.b32.xlu1 %v1077_v38, %s2835_s10  ;;  %v3420_v56 = vld [vmem:[%s4390_s7 + $0x46] ss:$8 sm:$0xf] }
 0x28e   : > { %v1704_v38 = vperm.slane %v3420_v56, 1 }
 0x292   : > { %1144 = vrot.lane.b32.xlu2 %v1139_v37, %s2838_s19  ;;  %v1945_v37 = vperm.slane %v3379_v17, 2 }
 0x295   : > { %1086 = vrot.lane.b32.xlu0 %v1079_v58, %s2835_s10  ;;  %1227 = vrot.lane.b32.xlu1 %v1223_v20, %s2836_s12  ;;  %v1138_v58 = vperm.slane %v3388_v44, 0  ;;  %v3431_v20 = vld [vmem:[%s4390_s7 + $0x47] ss:$8 sm:$0xf] }
 0x29a   : > { %1829 = vrot.lane.b32.xlu2 %v1824_v26, %s2828_s18  ;;  %v1764_v26 = vperm.slane %v3431_v20, 1 }
 0x29d   : > { %1231 = vrot.lane.b32.xlu0 %v1225_v31, %s2836_s12  ;;  %1287 = vrot.lane.b32.xlu1 %v1283_v36, %s2837_s16  ;;  %v1140_v31 = vperm.slane %v3388_v44, 2  ;;  %v1823_v36 = vperm.slane %v3398_v49, 0 }
 0x2a2   : > { %1889 = vrot.lane.b32.xlu2 %v1884_v7, %s2829_s22  ;;  %v1286_v7 = vperm.slane %v3360_v2, 3  ;;  %v1703_v2 = vperm.slane %v3420_v56, 0 }
 0x2a5   : > { %1291 = vrot.lane.b32.xlu0 %v1285_v32, %s2837_s16  ;;  %1947 = vrot.lane.b32.xlu1 %v1943_v61, %s2830_s24  ;;  %v1825_v32 = vperm.slane %v3398_v49, 2  ;;  %v1883_v61 = vperm.slane %v3409_v19, 0 }
 0x2aa   : > { %1709 = vrot.lane.b32.xlu2 %v1704_v38, %s2826_s9  ;;  %v3448_v38 = vld [vmem:[%s4390_s7 + $0x44] ss:$8 sm:$0xf] }
 0x2ab   : > { %v1584_v30 = vperm.slane %v3448_v38, 1 }
 0x2ad   : > { %1951 = vrot.lane.b32.xlu0 %v1945_v37, %s2830_s24  ;;  %1142 = vrot.lane.b32.xlu1 %v1138_v58, %s2838_s19  ;;  %v1585_v37 = vperm.slane %v3448_v38, 2  ;;  %v1885_v58 = vperm.slane %v3409_v19, 2 }
 0x2b2   : > { %1769 = vrot.lane.b32.xlu2 %v1764_v26, %s2827_s14  ;;  %v3459_v26 = vld [vmem:[%s4390_s7 + $0x45] ss:$8 sm:$0xf] }
 0x2b3   : > { %v1644_v42 = vperm.slane %v3459_v26, 1 }
 0x2b5   : > { %1146 = vrot.lane.b32.xlu0 %v1140_v31, %s2838_s19  ;;  %1827 = vrot.lane.b32.xlu1 %v1823_v36, %s2828_s18  ;;  %v1645_v36 = vperm.slane %v3459_v26, 2 }
 0x2ba   : > { %1293 = vrot.lane.b32.xlu2 %v1286_v7, %s2837_s16  ;;  %v1705_v7 = vperm.slane %v3420_v56, 2 }
 0x2bd   : > { %1831 = vrot.lane.b32.xlu0 %v1825_v32, %s2828_s18  ;;  %1887 = vrot.lane.b32.xlu1 %v1883_v61, %s2829_s22  ;;  %v1763_v32 = vperm.slane %v3431_v20, 0  ;;  %v3470_v61 = vld [vmem:[%s4390_s7 + $0x42] ss:$8 sm:$0xf] }
 0x2be   : > { %v1464_v34 = vperm.slane %v3470_v61, 1 }
 0x2c2   : > { %1591 = vrot.lane.b32.xlu2 %v1585_v37, %s2824_s23 }
 0x2c4   : > { %v1054_v31 = vpop.permute.xlu2 %1053 }
 0x2c5   : > { %1891 = vrot.lane.b32.xlu0 %v1885_v58, %s2829_s22  ;;  %1707 = vrot.lane.b32.xlu1 %v1703_v2, %s2826_s9  ;;  %v1463_v58 = vperm.slane %v3470_v61, 0  ;;  %v1765_v2 = vperm.slane %v3431_v20, 2 }
 0x2ca   : > { %1651 = vrot.lane.b32.xlu2 %v1645_v36, %s2825_s26  ;;  %v3483_v36 = vld [vmem:[%s4390_s7 + $0x43] ss:$8 sm:$0xf] }
 0x2cb   : > { %v1524_v28 = vperm.slane %v3483_v36, 1 }
 0x2cc   : > { %v3472_v37 = vpop.permute.xlu2 %1084 }
 0x2cd   : > { %1711 = vrot.lane.b32.xlu0 %v1705_v7, %s2826_s9  ;;  %1767 = vrot.lane.b32.xlu1 %v1763_v32, %s2827_s14  ;;  %v1523_v7 = vperm.slane %v3483_v36, 0  ;;  %v1583_v32 = vperm.slane %v3448_v38, 0 }
 0x2d2   : > { %1467 = vrot.lane.b32.xlu2 %v1463_v58, %s2822_s11 }
 0x2d4   : > { %v3485_v6 = vpop.permute.xlu2 %1229 }
 0x2d5   : > { %1771 = vrot.lane.b32.xlu0 %v1765_v2, %s2827_s14  ;;  %1233 = vrot.lane.b32.xlu1 %v1226_v48, %s2836_s12  ;;  %v1343_v48 = vperm.slane %v3496_v39, 0  ;;  %v1643_v2 = vperm.slane %v3459_v26, 0 }
 0x2da   : > { %1527 = vrot.lane.b32.xlu2 %v1523_v7, %s2823_s20  ;;  %v2499_v7 = vld [vmem:[%s4390_s7 + $0x41] ss:$8 sm:$0xf] }
 0x2db   : > { %v1405_v53 = vperm.slane %v2499_v7, 2 }
 0x2dc   : > { %v3498_v58 = vpop.permute.xlu2 %1289 }
 0x2dd   : > { %1587 = vrot.lane.b32.xlu0 %v1583_v32, %s2824_s23  ;;  %1589 = vrot.lane.b32.xlu1 %v1584_v30, %s2824_s23  ;;  %v1403_v32 = vperm.slane %v2499_v7, 0  ;;  %v1946_v30 = vperm.slane %v3379_v17, 3  ;;  %v1766_v17 = vperm.slane %v3431_v20, 3 }
 0x2e2   : > { %1347 = vrot.lane.b32.xlu2 %v1343_v48, %s2834_s25  ;;  %v1826_v48 = vperm.slane %v3398_v49, 3 }
 0x2e4   : > { %v3509_v55 = vpop.permute.xlu2 %1949 }
 0x2e5   : > { %1647 = vrot.lane.b32.xlu0 %v1643_v2, %s2825_s26  ;;  %1649 = vrot.lane.b32.xlu1 %v1644_v42, %s2825_s26  ;;  %v1465_v2 = vperm.slane %v3470_v61, 2 }
 0x2ea   : > { %1407 = vrot.lane.b32.xlu2 %v1403_v32, %s2832_s15 }
 0x2ec   : > { %v3516_v15 = vpop.permute.xlu2 %1144 }
 0x2ed   : > { %1953 = vrot.lane.b32.xlu0 %v1946_v30, %s2830_s24  ;;  %1148 = vrot.lane.b32.xlu1 %v1141_v62, %s2838_s19 }
 0x2f2   : > { %1833 = vrot.lane.b32.xlu2 %v1826_v48, %s2828_s18  ;;  %v1525_v48 = vperm.slane %v3483_v36, 2 }
 0x2f4   : > { %v3524_v42 = vpop.permute.xlu2 %1829 }
 0x2f5   : > { %1469 = vrot.lane.b32.xlu0 %v1464_v34, %s2822_s11  ;;  %1471 = vrot.lane.b32.xlu1 %v1465_v2, %s2822_s11 }
 0x2f7   : > { %v3529_v44 = vpop.permute.xlu0 %2654  ;;  %v2660_v32 = vpop.permute.xlu1 %2659 }
 0x2f8   : > { %v4413_v62 = vunpack.i.h.bf16 %v3529_v44  ;;  %v2662_v49 = vunpack.i.h.bf16 %v2660_v32  ;;  %v2661_v30 = vunpack.i.l.bf16 %v2660_v32 }
 0x2fa   : > { %1773 = vrot.lane.b32.xlu2 %v1766_v17, %s2827_s14  ;;  %v3538_v34 = vsel %vm1055_vm13, %v4413_v62, %v2661_v30  ;;  %v3541_v20 = vsel %vm1055_vm13, %v2662_v49, %v1054_v31  ;;  %v3544_v2 = vsel %vm1055_vm13, %v2661_v30, %v2662_v49  ;;  %v1466_v17 = vperm.slane %v3470_v61, 3 }
 0x2fb   : > { %4465 = vst [vmem:[#allocation29_spill] sm:$0xff] %v3541_v20  ;;  %v1345_v30 = vperm.slane %v3496_v39, 2  ;;  %v1404_v61 = vperm.slane %v2499_v7, 1 }
 0x2fc   : > { %v3546_v41 = vpop.permute.xlu2 %1889 }
 0x2fd   : > { %1529 = vrot.lane.b32.xlu0 %v1524_v28, %s2823_s20  ;;  %1531 = vrot.lane.b32.xlu1 %v1525_v48, %s2823_s20  ;;  %v1344_v28 = vperm.slane %v3496_v39, 1 }
 0x2ff   : > { %v1081_v32 = vpop.permute.xlu0 %1080  ;;  %v1083_v11 = vpop.permute.xlu1 %1082 }
 0x300   : > { %v1089_v62 = vsel %vm1088_vm14, %v1081_v32, %v1083_v11  ;;  %v1090_v31 = vsel %vm1088_vm14, %v1083_v11, %v3472_v37  ;;  %v1406_v11 = vperm.slane %v2499_v7, 3  ;;  %v3576_v54 = vmul.f32 0.0, %v1081_v32 }
 0x301   : > { %v3555_v60 = vmul.f32 %v1089_v62, %v2991_v5  ;;  %v3558_v49 = vmul.f32 %v1090_v31, %v3051_v9  ;;  %v1886_v32 = vperm.slane %v3409_v19, 3 }
 0x302   : > { %1473 = vrot.lane.b32.xlu2 %v1466_v17, %s2822_s11 }
 0x304   : > { %v3565_v48 = vpop.permute.xlu2 %1709 }
 0x305   : > { %1349 = vrot.lane.b32.xlu0 %v1344_v28, %s2834_s25  ;;  %1351 = vrot.lane.b32.xlu1 %v1345_v30, %s2834_s25 }
 0x307   : > { %v3569_v62 = vpop.permute.xlu0 %1086  ;;  %v3571_v31 = vpop.permute.xlu1 %1227 }
 0x308   : > { %v1091_v25 = vsel %vm1088_vm14, %v3472_v37, %v3569_v62  ;;  %v1243_v1 = vmul.f32 %v3571_v31, %v2991_v5 }
 0x309   : > { %v3579_v17 = vmul.f32 %v1091_v25, %v3045_v4  ;;  %v1706_v25 = vperm.slane %v3420_v56, 3 }
 0x30a   : > { %1413 = vrot.lane.b32.xlu2 %v1406_v11, %s2832_s15 }
 0x30c   : > { %v3584_v30 = vpop.permute.xlu2 %1769 }
 0x30d   : > { %1409 = vrot.lane.b32.xlu0 %v1404_v61, %s2832_s15  ;;  %1411 = vrot.lane.b32.xlu1 %v1405_v53, %s2832_s15  ;;  %v1586_v61 = vperm.slane %v3448_v38, 3  ;;  %v1646_v53 = vperm.slane %v3459_v26, 3 }
 0x30f   : > { %v3588_v46 = vpop.permute.xlu0 %1231  ;;  %v1288_v37 = vpop.permute.xlu1 %1287 }
 0x310   : > { %v1236_v63 = vsel %vm1179_vm15, %v3485_v6, %v3588_v46  ;;  %v1295_v39 = vsel %vm1117_vm0, %v1288_v37, %v3498_v58 }
 0x314   : > { %v3594_v7 = vpop.permute.xlu2 %1293 }
 0x315   : > { %1893 = vrot.lane.b32.xlu0 %v1886_v32, %s2829_s22  ;;  %1713 = vrot.lane.b32.xlu1 %v1706_v25, %s2826_s9 }
 0x317   : > { %v1292_v11 = vpop.permute.xlu0 %1291  ;;  %v3596_v28 = vpop.permute.xlu1 %1947 }
 0x318   : > { %v1955_v19 = vsel %vm444_vm9, %v3596_v28, %v3509_v55  ;;  %v1296_v51 = vsel %vm1117_vm0, %v3498_v58, %v1292_v11 }
 0x319   : > { %v1964_v26 = vmul.f32 %v1955_v19, %v3051_v9  ;;  %v1245_v19 = vmul.f32 %v1236_v63, %v3045_v4 }
 0x31c   : > { %v3609_v25 = vpop.permute.xlu2 %1591 }
 0x31d   : > { %1593 = vrot.lane.b32.xlu0 %v1586_v61, %s2824_s23  ;;  %1653 = vrot.lane.b32.xlu1 %v1646_v53, %s2825_s26  ;;  %v1526_v53 = vperm.slane %v3483_v36, 3  ;;  %v1235_v36 = vsel %vm1179_vm15, %v3571_v31, %v3485_v6  ;;  %v1303_v6 = vmul.f32 %v1288_v37, %v2991_v5 }
 0x31f   : > { %v3605_v56 = vpop.permute.xlu0 %1951  ;;  %v3607_v32 = vpop.permute.xlu1 %1142 }
 0x320   : > { %v1956_v38 = vsel %vm444_vm9, %v3509_v55, %v3605_v56  ;;  %v1297_v55 = vsel %vm1117_vm0, %v1292_v11, %v3594_v7 }
 0x321   : > { %v1965_v61 = vmul.f32 %v1956_v38, %v3045_v4  ;;  %v1305_v38 = vmul.f32 %v1296_v51, %v3045_v4 }
 0x323   : > { %v2673_v47 = vpack.i.bf16 %v1965_v61, %v1964_v26  ;;  %v1306_v61 = vmul.f32 %v1297_v55, %v3036_v52  ;;  %v1151_v55 = vsel %vm1150_vm10, %v3607_v32, %v3516_v15 }
 0x324   : > { %v3643_v23 = vpop.permute.xlu2 %1651 }
 0x325   : > { %1533 = vrot.lane.b32.xlu0 %v1526_v53, %s2823_s20  ;;  %1353 = vrot.lane.b32.xlu1 %v1346_v57, %s2834_s25  ;;  %v1244_v57 = vmul.f32 %v1235_v36, %v3051_v9  ;;  %v1304_v53 = vmul.f32 %v1295_v39, %v3051_v9  ;;  %v2688_v51 = vpack.i.bf16 %v1306_v61, %v1303_v6 }
 0x326   : > { %2674 = vrot.lane.b32.xlu2 %v2673_v47, %s2822_s11 }
 0x327   : > { %v3635_v26 = vpop.permute.xlu0 %1146  ;;  %v3637_v11 = vpop.permute.xlu1 %1827  ;;  %v2663_v47 = vpack.i.bf16 %v1245_v19, %v1244_v57  ;;  %v2668_v58 = vpack.i.bf16 %v1305_v38, %v1304_v53  ;;  %v1160_v19 = vmul.f32 %v1151_v55, %v2991_v5 }
 0x328   : > { %v1152_v63 = vsel %vm1150_vm10, %v3516_v15, %v3635_v26 }
 0x329   : > { %v1161_v37 = vmul.f32 %v1152_v63, %v3051_v9 }
 0x32b   : > { %v2678_v38 = vpack.i.bf16 %v1161_v37, %v1160_v19 }
 0x32c   : > { %v3658_v57 = vpop.permute.xlu2 %1467 }
 0x32d   : > { %2664 = vrot.lane.b32.xlu0 %v2663_v47, %s2838_s19  ;;  %2669 = vrot.lane.b32.xlu1 %v2668_v58, %s2835_s10 }
 0x32e   : > { %2689 = vrot.lane.b32.xlu2 %v2688_v51, %s2835_s10 }
 0x32f   : > { %v1832_v36 = vpop.permute.xlu0 %1831  ;;  %v3655_v39 = vpop.permute.xlu1 %1887 }
 0x330   : > { %v1895_v61 = vsel %vm506_vm8, %v3655_v39, %v3546_v41 }
 0x331   : > { %v1904_v47 = vmul.f32 %v1895_v61, %v3051_v9 }
 0x334   : > { %v3674_v51 = vpop.permute.xlu2 %1527 }
 0x335   : > { %2679 = vrot.lane.b32.xlu0 %v2678_v38, %s2836_s12 }
 0x337   : > { %v3664_v53 = vpop.permute.xlu0 %1891  ;;  %v3666_v15 = vpop.permute.xlu1 %1707 }
 0x338   : > { %v1896_v6 = vsel %vm506_vm8, %v3546_v41, %v3664_v53  ;;  %v1715_v55 = vsel %vm663_vm5, %v3666_v15, %v3565_v48 }
 0x339   : > { %v1905_v58 = vmul.f32 %v1896_v6, %v3045_v4  ;;  %v1724_v38 = vmul.f32 %v1715_v55, %v3051_v9 }
 0x33b   : > { %v2703_v63 = vpack.i.bf16 %v1905_v58, %v1904_v47 }
 0x33d   : > { %2704 = vrot.lane.b32.xlu2 %v2703_v63, %s2823_s20  ;;  %v3691_v63 = vpop.permute.xlu2 %1347 }
 0x33f   : > { %v3679_v37 = vpop.permute.xlu0 %1711  ;;  %v3681_v19 = vpop.permute.xlu1 %1767 }
 0x340   : > { %v1716_v41 = vsel %vm663_vm5, %v3565_v48, %v3679_v37 }
 0x341   : > { %v1725_v61 = vmul.f32 %v1716_v41, %v3045_v4  ;;  %v1836_v41 = vsel %vm568_vm7, %v3524_v42, %v1832_v36 }
 0x343   : > { %v2718_v6 = vpack.i.bf16 %v1725_v61, %v1724_v38  ;;  %v1835_v38 = vsel %vm568_vm7, %v3637_v11, %v3524_v42  ;;  %v1845_v61 = vmul.f32 %v1836_v41, %v3045_v4 }
 0x344   : > { %v1844_v20 = vmul.f32 %v1835_v38, %v3051_v9  ;;  %v1963_v38 = vmul.f32 %v3596_v28, %v2991_v5 }
 0x345   : > { %2719 = vrot.lane.b32.xlu2 %v2718_v6, %s2826_s9  ;;  %v3709_v31 = vpop.permute.xlu2 %1407 }
 0x347   : > { %v1772_v47 = vpop.permute.xlu0 %1771  ;;  %v3689_v58 = vpop.permute.xlu1 %1233 }
 0x348   : > { %v1237_v45 = vsel %vm1179_vm15, %v3588_v46, %v3689_v58 }
 0x349   : > { %v1246_v48 = vmul.f32 %v1237_v45, %v3036_v52  ;;  %v2698_v45 = vpack.i.bf16 %v1845_v61, %v1844_v20  ;;  %v1159_v61 = vmul.f32 0.0, %v3607_v32 }
 0x34b   : > { %v2683_v55 = vpack.i.bf16 %v1246_v48, %v1243_v1 }
 0x34d   : > { %2684 = vrot.lane.b32.xlu1 %v2683_v55, %s2838_s19  ;;  %v3716_v55 = vpop.permute.xlu2 %1833 }
 0x34e   : > { %v1837_v21 = vsel %vm568_vm7, %v1832_v36, %v3716_v55 }
 0x34f   : > { %v3706_v6 = vpop.permute.xlu0 %1587  ;;  %v1590_v46 = vpop.permute.xlu1 %1589 }
 0x355   : > { %2699 = vrot.lane.b32.xlu1 %v2698_v45, %s2824_s23 }
 0x357   : > { %v3712_v1 = vpop.permute.xlu0 %1647  ;;  %v3714_v48 = vpop.permute.xlu1 %1649 }
 0x35f   : > { %v3718_v8 = vpop.permute.xlu0 %1953  ;;  %v3720_v42 = vpop.permute.xlu1 %1148 }
 0x360   : > { %v1957_v41 = vsel %vm444_vm9, %v3605_v56, %v3718_v8  ;;  %v1153_v20 = vsel %vm1150_vm10, %v3635_v26, %v3720_v42  ;;  %v3737_v56 = vpop.permute.xlu2 %1773  ;;  %v1846_v26 = vmul.f32 %v1837_v21, %v3036_v52  ;;  %v4466_v21 = vpack.i.bf16 %v3558_v49, %v3555_v60 }
 0x361   : > { %v1966_v45 = vmul.f32 %v1957_v41, %v3036_v52  ;;  %v1162_v0 = vmul.f32 %v1153_v20, %v3045_v4  ;;  %v1843_v41 = vmul.f32 %v3637_v11, %v2991_v5  ;;  %v1776_v20 = vsel %vm630_vm6, %v3584_v30, %v1772_v47 }
 0x362   : > { %v1775_v11 = vsel %vm630_vm6, %v3681_v19, %v3584_v30 }
 0x363   : > { %v2713_v12 = vpack.i.bf16 %v1162_v0, %v1159_v61  ;;  %v2693_v14 = vpack.i.bf16 %v1966_v45, %v1963_v38  ;;  %v2728_v0 = vpack.i.bf16 %v1846_v26, %v1843_v41  ;;  %v1785_v38 = vmul.f32 %v1776_v20, %v3045_v4 }
 0x364   : > { %v1784_v60 = vmul.f32 %v1775_v11, %v3051_v9 }
 0x365   : > { %2694 = vrot.lane.b32.xlu0 %v2693_v14, %s2822_s11  ;;  %2714 = vrot.lane.b32.xlu1 %v2713_v12, %s2836_s12  ;;  %v1595_v14 = vsel %vm539_vm3, %v3706_v6, %v1590_v46  ;;  %v1596_v12 = vsel %vm539_vm3, %v1590_v46, %v3609_v25 }
 0x366   : > { %v1604_v61 = vmul.f32 %v1595_v14, %v3051_v9  ;;  %v1605_v45 = vmul.f32 %v1596_v12, %v3045_v4  ;;  %v2723_v49 = vpack.i.bf16 %v1785_v38, %v1784_v60 }
 0x367   : > { %v3740_v28 = vpop.permute.xlu0 %1469  ;;  %v3742_v32 = vpop.permute.xlu1 %1471 }
 0x368   : > { %v3760_v36 = vpop.permute.xlu2 %1473  ;;  %v2743_v41 = vpack.i.bf16 %v1605_v45, %v1604_v61 }
 0x36d   : > { %2709 = vrot.lane.b32.xlu0 %v4466_v21, %s2837_s16  ;;  %2729 = vrot.lane.b32.xlu1 %v2728_v0, %s2824_s23  ;;  %v1777_v0 = vsel %vm630_vm6, %v1772_v47, %v3737_v56  ;;  %v1783_v21 = vmul.f32 %v3681_v19, %v2991_v5  ;;  %v4467_v47 = vpack.i.bf16 %v3579_v17, %v3576_v54 }
 0x36e   : > { %v1786_v20 = vmul.f32 %v1777_v0, %v3036_v52 }
 0x36f   : > { %v1530_v46 = vpop.permute.xlu0 %1529  ;;  %v3765_v26 = vpop.permute.xlu1 %1531 }
 0x370   : > { %v3772_v30 = vpop.permute.xlu2 %1413  ;;  %v2758_v11 = vpack.i.bf16 %v1786_v20, %v1783_v21 }
 0x375   : > { %2724 = vrot.lane.b32.xlu0 %v2723_v49, %s2825_s26  ;;  %2744 = vrot.lane.b32.xlu1 %v2743_v41, %s2828_s18 }
 0x377   : > { %v3775_v14 = vpop.permute.xlu0 %1349  ;;  %v3777_v12 = vpop.permute.xlu1 %1351 }
 0x37d   : > { %2739 = vrot.lane.b32.xlu0 %v4467_v47, %s2837_s16  ;;  %2759 = vrot.lane.b32.xlu1 %v2758_v11, %s2825_s26  ;;  %v1903_v47 = vmul.f32 %v3655_v39, %v2991_v5  ;;  %v1535_v39 = vsel %vm477_vm2, %v3674_v51, %v1530_v46 }
 0x37f   : > { %v1410_v38 = vpop.permute.xlu0 %1409  ;;  %v1412_v61 = vpop.permute.xlu1 %1411 }
 0x380   : > { %v3786_v45 = vpop.permute.xlu2 %2674  ;;  %v3790_v60 = vsel %vm993_vm11, %v1412_v61, %v3772_v30 }
 0x381   : > { %v4438_v49 = vunpack.i.h.bf16 %v3786_v45  ;;  %v4439_v19 = vunpack.i.l.bf16 %v3786_v45 }
 0x383   : > { %v1984_v54 = vsel %vm415_vm1, %v4439_v19, %v4438_v49 }
 0x384   : > { %v2157_v17 = vpack.c.bf16 %v1984_v54, %v1984_v54  ;;  %v1723_v54 = vmul.f32 %v3666_v15, %v2991_v5  ;;  %v1536_v15 = vsel %vm477_vm2, %v1530_v46, %v3765_v26 }
 0x386   : > { %v2181_v41 = vsel %vm2176_vm12, %v2157_v17, 0 }
 0x387   : > { %2230 = vmatpush.bf16.msrb.mxu3 %v2181_v41  ;;  %v3800_v0 = vpop.permute.xlu0 %1893  ;;  %v3802_v20 = vpop.permute.xlu1 %1713 }
 0x388   : > { %v1897_v21 = vsel %vm506_vm8, %v3664_v53, %v3800_v0  ;;  %v1717_v11 = vsel %vm663_vm5, %v3679_v37, %v3802_v20  ;;  %v1655_v53 = vsel %vm601_vm4, %v3712_v1, %v3714_v48  ;;  %v1656_v37 = vsel %vm601_vm4, %v3714_v48, %v3643_v23 }
 0x389   : > { %v1906_v17 = vmul.f32 %v1897_v21, %v3036_v52  ;;  %v1726_v41 = vmul.f32 %v1717_v11, %v3036_v52  ;;  %v1664_v21 = vmul.f32 %v1655_v53, %v3051_v9  ;;  %v1665_v11 = vmul.f32 %v1656_v37, %v3045_v4 }
 0x38a   : > { %v1544_v48 = vmul.f32 %v1535_v39, %v3051_v9  ;;  %v1475_v37 = vsel %vm415_vm1, %v3658_v57, %v3740_v28  ;;  %v1476_v39 = vsel %vm415_vm1, %v3740_v28, %v3742_v32  ;;  %v1543_v28 = vmul.f32 %v3674_v51, %v2991_v5 }
 0x38b   : > { %v2733_v49 = vpack.i.bf16 %v1906_v17, %v1903_v47  ;;  %v2753_v19 = vpack.i.bf16 %v1726_v41, %v1723_v54  ;;  %v1545_v17 = vmul.f32 %v1536_v15, %v3045_v4  ;;  %v2748_v41 = vpack.i.bf16 %v1665_v11, %v1664_v21 }
 0x38c   : > { %v1416_v51 = vsel %vm993_vm11, %v1410_v38, %v1412_v61 }
 0x38d   : > { %2734 = vrot.lane.b32.xlu2 %v2733_v49, %s2823_s20  ;;  %2754 = vrot.lane.b32.xlu0 %v2753_v19, %s2826_s9  ;;  %v1603_v49 = vmul.f32 %v3706_v6, %v2991_v5  ;;  %v2768_v15 = vpack.i.bf16 %v1545_v17, %v1544_v48  ;;  %v1485_v6 = vmul.f32 %v1476_v39, %v3045_v4  ;;  %v1307_v17 = vmul.f32 0.0, %v3594_v7  ;;  %v3876_v7 = vpop.permute.xlu2 %2689 }
 0x38f   : > { %v3830_v47 = vpop.permute.xlu0 %1593  ;;  %v3832_v54 = vpop.permute.xlu1 %1653 }
 0x390   : > { %v1597_v46 = vsel %vm539_vm3, %v3609_v25, %v3830_v47  ;;  %v1484_v25 = vmul.f32 %v1475_v37, %v3051_v9  ;;  %v1415_v37 = vsel %vm993_vm11, %v3709_v31, %v1410_v38  ;;  %v1425_v38 = vmul.f32 %v1416_v51, %v3045_v4 }
 0x391   : > { %v1606_v19 = vmul.f32 %v1597_v46, %v3036_v52  ;;  %v1356_v51 = vsel %vm1055_vm13, %v3775_v14, %v3777_v12  ;;  %vm4493_vm11 = vcmask 973824  }
 0x393   : > { %v2773_v53 = vpack.i.bf16 %v1606_v19, %v1603_v49  ;;  %v2763_v49 = vpack.i.bf16 %v1485_v6, %v1484_v25 }
 0x395   : > { %2749 = vrot.lane.b32.xlu2 %v2748_v41, %s2827_s14  ;;  %2774 = vrot.lane.b32.xlu1 %v2773_v53, %s2828_s18  ;;  %v1247_v41 = vmul.f32 0.0, %v3689_v58  ;;  %v1477_v53 = vsel %vm415_vm1, %v3742_v32, %v3760_v36  ;;  %v1483_v58 = vmul.f32 %v3658_v57, %v2991_v5 }
 0x396   : > { %2769 = vrot.lane.b32.xlu0 %v2768_v15, %s2829_s22  ;;  %v1486_v32 = vmul.f32 %v1477_v53, %v3036_v52  ;;  %v1424_v15 = vmul.f32 %v1415_v37, %v3051_v9  ;;  %v1355_v37 = vsel %vm1055_vm13, %v3691_v63, %v3775_v14 }
 0x397   : > { %v3853_v21 = vpop.permute.xlu0 %1533  ;;  %v3858_v46 = vpop.permute.xlu1 %1353 }
 0x398   : > { %v1537_v11 = vsel %vm477_vm2, %v3765_v26, %v3853_v21  ;;  %v1657_v26 = vsel %vm601_vm4, %v3643_v23, %v3832_v54 }
 0x399   : > { %v1546_v48 = vmul.f32 %v1537_v11, %v3036_v52  ;;  %v1666_v23 = vmul.f32 %v1657_v26, %v3036_v52  ;;  %v1663_v11 = vmul.f32 %v3712_v1, %v2991_v5 }
 0x39b   : > { %v2798_v19 = vpack.i.bf16 %v1546_v48, %v1543_v28  ;;  %v2692_v28 = vunpack.i.h.bf16 %v3876_v7  ;;  %v2778_v53 = vpack.i.bf16 %v1666_v23, %v1663_v11  ;;  %v1365_v23 = vmul.f32 %v1356_v51, %v3045_v4 }
 0x39c   : > { %v1907_v51 = vmul.f32 0.0, %v3800_v0 }
 0x39d   : > { %1321 = vrot.lane.b32.xlu1 %v1307_v17, %s2835_s10  ;;  %2764 = vrot.lane.b32.xlu2 %v2763_v49, %s2830_s24  ;;  %v3892_v49 = vld [vmem:[%s4390_s7 + $0x25] ss:$8 sm:$0xf]  ;;  %s4468_s10 = smov 119  }
 0x39e   : > { %1261 = vrot.lane.b32.xlu0 %v1247_v41, %s2838_s19  ;;  %v2793_v41 = vpack.i.bf16 %v1486_v32, %v1483_v58  ;;  %v1200_v58 = vperm.slane %v3892_v49, 1  ;;  %v1364_v32 = vmul.f32 %v1355_v37, %v3051_v9  ;;  %s4469_s19 = smov 120   ;;  %v1423_v37 = vmul.f32 %v3709_v31, %v2991_v5 }
 0x39f   : > { %v2665_v39 = vpop.permute.xlu0 %2664  ;;  %v2670_v6 = vpop.permute.xlu1 %2669  ;;  %v2691_v31 = vunpack.i.l.bf16 %v3876_v7  ;;  %v4491_v7 = vunpack.i.h.bf16 %v3786_v45 }
 0x3a0   : > { %v2667_v61 = vunpack.i.h.bf16 %v2665_v39  ;;  %v2666_v25 = vunpack.i.l.bf16 %v2665_v39  ;;  %v2672_v48 = vunpack.i.h.bf16 %v2670_v6  ;;  %v2671_v17 = vunpack.i.l.bf16 %v2670_v6 }
 0x3a1   : > { %v2788_v39 = vpack.i.bf16 %v1425_v38, %v1424_v15  ;;  %v1208_v15 = vmul.f32 %v1200_v58, %v3051_v9  ;;  %v1101_v9 = vmul.f32 %v3569_v62, %v3036_v52  ;;  %v1667_v58 = vmul.f32 0.0, %v3832_v54 }
 0x3a2   : > { %v1264_v57 = vsel %vm1150_vm10, %v2666_v25, %v2667_v61  ;;  %v3897_v26 = vsel %vm1088_vm14, %v2672_v48, %v2692_v28  ;;  %v1324_v1 = vsel %vm1088_vm14, %v2671_v17, %v2672_v48 }
 0x3a3   : > { %v2133_v6 = vpack.c.bf16 %v1324_v1, %v1264_v57  ;;  %v1163_v57 = vmul.f32 %v3720_v42, %v3036_v52  ;;  %v1967_v1 = vmul.f32 0.0, %v3718_v8  ;;  %v1363_v8 = vmul.f32 %v3691_v63, %v2991_v5 }
 0x3a4   : > { %v1727_v42 = vmul.f32 0.0, %v3802_v20  ;;  %v1323_v20 = vsel %vm1088_vm14, %v2691_v31, %v2671_v17 }
 0x3a5   : > { %2794 = vrot.lane.b32.xlu1 %v2793_v41, %s2830_s24  ;;  %2779 = vrot.lane.b32.xlu2 %v2778_v53, %s2827_s14  ;;  %v2783_v41 = vpack.i.bf16 %v1365_v23, %v1364_v32  ;;  %v3956_v32 = vpop.permute.xlu2 %2704 }
 0x3a6   : > { %2789 = vrot.lane.b32.xlu0 %v2788_v39, %s4468_s10  ;;  %2215 = vmatpush.bf16.msrb.mxu2 %v2133_v6  ;;  %v1847_v6 = vmul.f32 0.0, %v3716_v55 }
 0x3a7   : > { %v3912_v11 = vpop.permute.xlu0 %2679 }
 0x3a8   : > { %v2682_v48 = vunpack.i.h.bf16 %v3912_v11  ;;  %v2681_v14 = vunpack.i.l.bf16 %v3912_v11 }
 0x3aa   : > { %v1181_v38 = vsel %vm1179_vm15, %v2681_v14, %v2682_v48 }
 0x3ab   : > { %v2129_v53 = vpack.c.bf16 %v1208_v15, %v1181_v38  ;;  %v1607_v38 = vmul.f32 0.0, %v3830_v47 }
 0x3ad   : > { %1177 = vrot.lane.b32.xlu1 %v1163_v57, %s2836_s12  ;;  %2784 = vrot.lane.b32.xlu2 %v2783_v41, %s4469_s19  ;;  %v1787_v41 = vmul.f32 0.0, %v3737_v56  ;;  %v4028_v11 = vpop.permute.xlu2 %2719 }
 0x3ae   : > { %1981 = vrot.lane.b32.xlu0 %v1967_v1, %s2822_s11  ;;  %2216 = vmatpush.bf16.msrb.mxu2 %v2129_v53  ;;  %v1487_v53 = vmul.f32 0.0, %v3760_v36  ;;  %v1367_v36 = vmul.f32 0.0, %v3858_v46 }
 0x3b5   : > { %1115 = vrot.lane.b32.xlu1 %v1101_v9, %s2837_s16  ;;  %2799 = vrot.lane.b32.xlu2 %v2798_v19, %s2829_s22  ;;  %v1426_v9 = vmul.f32 %v3790_v60, %v3036_v52  ;;  %v1199_v60 = vperm.slane %v3892_v49, 0  ;;  %s4532_s16 = sshll.u32 %s4534_s28, 6 }
 0x3b6   : > { %1433 = vrot.lane.b32.xlu0 %v1423_v37, %s4468_s10  ;;  %v1357_v37 = vsel %vm1055_vm13, %v3777_v12, %v3858_v46  ;;  %s4363_s21 = scalar_lea.vmem %s4391_s8, %s4532_s16 }
 0x3b7   : > { %v1366_v56 = vmul.f32 %v1357_v37, %v3036_v52  ;;  %v2722_v37 = vunpack.i.h.bf16 %v4028_v11 }
 0x3bd   : > { %1741 = vrot.lane.b32.xlu1 %v1727_v42, %s2826_s9  ;;  %1373 = vrot.lane.b32.xlu2 %v1363_v8, %s4469_s19  ;;  %v1427_v8 = vmul.f32 0.0, %v3772_v30  ;;  %v1201_v42 = vperm.slane %v3892_v49, 2 }
 0x3be   : > { %1921 = vrot.lane.b32.xlu0 %v1907_v51, %s2823_s20 }
 0x3bf   : > { %v3942_v62 = vpop.permute.xlu1 %2684 }
 0x3c0   : > { %v2687_v19 = vunpack.i.h.bf16 %v3942_v62  ;;  %v2686_v39 = vunpack.i.l.bf16 %v3942_v62 }
 0x3c2   : > { %v3950_v63 = vsel %vm1150_vm10, %v2667_v61, %v2687_v19  ;;  %v1263_v0 = vsel %vm1150_vm10, %v2686_v39, %v2666_v25  ;;  %v2707_v61 = vunpack.i.h.bf16 %v3956_v32  ;;  %v2706_v25 = vunpack.i.l.bf16 %v3956_v32 }
 0x3c3   : > { %v2134_v23 = vpack.c.bf16 %v3897_v26, %v3950_v63  ;;  %v2132_v15 = vpack.c.bf16 %v1323_v20, %v1263_v0  ;;  %v1207_v39 = vmul.f32 %v1199_v60, %v2991_v5  ;;  %v4005_v0 = vmul.f32 %v1201_v42, %v3045_v4  ;;  %v2303_v4 = vld [vmem:[%s4389_s6] sm:$0xff] }
 0x3c4   : > { %v1924_v57 = vsel %vm477_vm2, %v2706_v25, %v2707_v61  ;;  %v1547_v5 = vmul.f32 0.0, %v3853_v21 }
 0x3c5   : > { %1681 = vrot.lane.b32.xlu1 %v1667_v58, %s2827_s14  ;;  %1861 = vrot.lane.b32.xlu2 %v1847_v6, %s2824_s23  ;;  %v4470_v6 = vunpack.i.l.bf16 %v3786_v45 }
 0x3c6   : > { %1621 = vrot.lane.b32.xlu0 %v1607_v38, %s2828_s18  ;;  %2189 = vmatpush.bf16.msrb.mxu0 %v2132_v15 }
 0x3c7   : > { %v3966_v55 = vpop.permute.xlu1 %2699 }
 0x3c8   : > { %v2702_v54 = vunpack.i.h.bf16 %v3966_v55  ;;  %v2701_v17 = vunpack.i.l.bf16 %v3966_v55 }
 0x3ca   : > { %v1864_v47 = vsel %vm539_vm3, %v2701_v17, %v2702_v54 }
 0x3cb   : > { %v2153_v1 = vpack.c.bf16 %v1924_v57, %v1864_v47 }
 0x3cd   : > { %1501 = vrot.lane.b32.xlu1 %v1487_v53, %s2830_s24  ;;  %1801 = vrot.lane.b32.xlu2 %v1787_v41, %s2825_s26 }
 0x3ce   : > { %1439 = vrot.lane.b32.xlu0 %v1426_v9, %s4468_s10  ;;  %2231 = vmatpush.bf16.msrb.mxu3 %v2153_v1 }
 0x3d5   : > { %1441 = vrot.lane.b32.xlu1 %v1427_v8, %s4468_s10  ;;  %1379 = vrot.lane.b32.xlu2 %v1366_v56, %s4469_s19  ;;  %v2721_v8 = vunpack.i.l.bf16 %v4028_v11 }
 0x3d6   : > { %1381 = vrot.lane.b32.xlu0 %v1367_v36, %s4469_s19 }
 0x3d7   : > { %v3996_v51 = vpop.permute.xlu0 %2694  ;;  %v3998_v31 = vpop.permute.xlu1 %2714 }
 0x3d8   : > { %v2696_v30 = vunpack.i.l.bf16 %v3996_v51  ;;  %v2717_v12 = vunpack.i.h.bf16 %v3998_v31  ;;  %v2716_v46 = vunpack.i.l.bf16 %v3998_v31 }
 0x3da   : > { %v1180_v20 = vsel %vm1179_vm15, %v2716_v46, %v2681_v14  ;;  %v1983_v58 = vsel %vm415_vm1, %v2696_v30, %v4470_v6  ;;  %v4018_v15 = vsel %vm1179_vm15, %v2682_v48, %v2717_v12  ;;  %v1744_v6 = vsel %vm663_vm5, %v2721_v8, %v2722_v37 }
 0x3db   : > { %v2128_v38 = vpack.c.bf16 %v1207_v39, %v1180_v20  ;;  %v2156_v47 = vpack.c.bf16 %v1983_v58, %v1983_v58  ;;  %v2130_v14 = vpack.c.bf16 %v4005_v0, %v4018_v15  ;;  %v4504_v15 = vld [vmem:[#allocation22_spill] sm:$0xff] }
 0x3dd   : > { %1561 = vrot.lane.b32.xlu2 %v1547_v5, %s2829_s22  ;;  %2190 = vmatpush.bf16.msrb.mxu0 %v2128_v38  ;;  %v2178_v57 = vsel %vm2176_vm12, %v2156_v47, 0  ;;  %v2656_v5 = vunpack.i.l.bf16 %v3529_v44 }
 0x3de   : > { %2307 = vperm.xlu0 %2552, %v2303_v4   ;;  %2204 = vmatpush.bf16.msrb.mxu1 %v2178_v57 }
 0x3df   : > { %v2710_v48 = vpop.permute.xlu0 %2709  ;;  %v4030_v53 = vpop.permute.xlu1 %2729 }
 0x3e0   : > { %v2712_v21 = vunpack.i.h.bf16 %v2710_v48  ;;  %v2711_v41 = vunpack.i.l.bf16 %v2710_v48  ;;  %v2731_v56 = vunpack.i.l.bf16 %v4030_v53 }
 0x3e2   : > { %v1119_v1 = vsel %vm1117_vm0, %v2711_v41, %v2712_v21  ;;  %v1863_v39 = vsel %vm539_vm3, %v2731_v56, %v2701_v17 }
 0x3e3   : > { %v2125_v9 = vpack.c.bf16 %v1119_v1, %v3538_v34  ;;  %v4471_v34 = vpack.c.bf16 %v3349_v22, %v3305_v59 }
 0x3e5   : > { %2217 = vmatpush.bf16.msrb.mxu2 %v2125_v9 }
 0x3e7   : > { %v4037_v36 = vpop.permute.xlu2 %2734  ;;  %v4039_v60 = vpop.permute.xlu0 %2724 }
 0x3e8   : > { %v2736_v42 = vunpack.i.l.bf16 %v4037_v36  ;;  %v2727_v30 = vunpack.i.h.bf16 %v4039_v60  ;;  %v2726_v46 = vunpack.i.l.bf16 %v4039_v60  ;;  %v4061_v59 = vpop.permute.xlu1 %2744 }
 0x3e9   : > { %2218 = vmatpush.bf16.msrb.mxu2 %v4471_v34  ;;  %v2747_v4 = vunpack.i.h.bf16 %v4061_v59  ;;  %v2746_v38 = vunpack.i.l.bf16 %v4061_v59 }
 0x3ea   : > { %v1923_v20 = vsel %vm477_vm2, %v2736_v42, %v2706_v25  ;;  %v1804_v58 = vsel %vm601_vm4, %v2726_v46, %v2727_v30  ;;  %v4472_v25 = vpack.c.bf16 %v3270_v27, %v3265_v43  ;;  %v4473_v43 = vpack.c.bf16 %v3213_v33, %v3208_v10 }
 0x3eb   : > { %v2152_v22 = vpack.c.bf16 %v1923_v20, %v1863_v39  ;;  %v2149_v17 = vpack.c.bf16 %v1804_v58, %v1744_v6  ;;  %v4474_v27 = vunpack.i.h.bf16 %v3529_v44  ;;  %v1624_v39 = vsel %vm568_vm7, %v2746_v38, %v2747_v4 }
 0x3ec   : > { %v4475_v58 = vpack.c.bf16 %v3235_v3, %v3230_v50  ;;  %v4479_v50 = vld [vmem:[#allocation9_spill] sm:$0xff] }
 0x3ed   : > { %2205 = vmatpush.bf16.msrb.mxu1 %v2152_v22  ;;  %2219 = vmatpush.bf16.msrb.mxu2 %v4472_v25  ;;  %v1056_v42 = vsel %vm1055_vm13, %v2656_v5, %v4474_v27  ;;  %v2586_v22 = vunpack.i.l.bf16 %v3152_v13  ;;  %v4476_v5 = vunpack.i.h.bf16 %v3174_v29  ;;  %v2576_v3 = vunpack.i.l.bf16 %v4479_v50 }
 0x3ee   : > { %2232 = vmatpush.bf16.msrb.mxu3 %v2149_v17  ;;  %v4480_v27 = vunpack.i.h.bf16 %v3152_v13 }
 0x3ef   : > { %v4069_v47 = vpop.permute.xlu0 %2739  ;;  %v4071_v57 = vpop.permute.xlu2 %2749 }
 0x3f0   : > { %v2742_v48 = vunpack.i.h.bf16 %v4069_v47  ;;  %v2741_v1 = vunpack.i.l.bf16 %v4069_v47  ;;  %v2752_v9 = vunpack.i.h.bf16 %v4071_v57  ;;  %v2751_v56 = vunpack.i.l.bf16 %v4071_v57 }
 0x3f1   : > { %2220 = vmatpush.bf16.msrb.mxu2 %v4473_v43  ;;  %v4478_v43 = vpack.c.bf16 %v3188_v40, %v3183_v35  ;;  %v4131_v35 = vld [vmem:[%s4385_s2] sm:$0xff]  ;;  %v4483_v40 = vld [vmem:[#allocation5_spill] sm:$0xff] }
 0x3f2   : > { %v1118_v34 = vsel %vm1117_vm0, %v2741_v1, %v2711_v41  ;;  %v1684_v20 = vsel %vm630_vm6, %v2751_v56, %v2752_v9  ;;  %v4097_v10 = vsel %vm1117_vm0, %v2712_v21, %v2742_v48  ;;  %v2591_v41 = vunpack.i.l.bf16 %v3174_v29  ;;  %v4481_v29 = vld [vmem:[#allocation6_spill] sm:$0xff] }
 0x3f3   : > { %v2124_v33 = vpack.c.bf16 %v1118_v34, %v1056_v42  ;;  %v2145_v44 = vpack.c.bf16 %v1684_v20, %v1624_v39  ;;  %v2581_v21 = vunpack.i.l.bf16 %v3156_v16  ;;  %v4477_v1 = vpack.c.bf16 %v3331_v24, %v3328_v18  ;;  %v4122_v34 = vpop.permute.xlu1 %2759 }
 0x3f4   : > { %v872_v25 = vsel %vm477_vm2, %v2591_v41, %v4476_v5  ;;  %v812_v42 = vsel %vm539_vm3, %v2586_v22, %v4480_v27  ;;  %v2566_v20 = vunpack.i.l.bf16 %v4481_v29  ;;  %v2571_v24 = vunpack.i.l.bf16 %v4483_v40  ;;  %v4485_v5 = vld [vmem:[#allocation8_spill] sm:$0xff] }
 0x3f5   : > { %2191 = vmatpush.bf16.msrb.mxu0 %v2124_v33  ;;  %2221 = vmatpush.bf16.msrb.mxu2 %v4475_v58  ;;  %v2116_v39 = vpack.c.bf16 %v872_v25, %v812_v42  ;;  %v4482_v33 = vunpack.i.h.bf16 %v3156_v16  ;;  %v2761_v13 = vunpack.i.l.bf16 %v4122_v34  ;;  %v2167_v58 = vunpack.c.l.b16 %v4131_v35 }
 0x3f6   : > { %2233 = vmatpush.bf16.msrb.mxu3 %v2145_v44  ;;  %v4484_v44 = vunpack.i.h.bf16 %v4479_v50  ;;  %v2561_v25 = vunpack.i.l.bf16 %v4485_v5  ;;  %v4487_v50 = vld [vmem:[#allocation4_spill] sm:$0xff] }
 0x3f7   : > { %v4106_v17 = vpop.permute.xlu2 %2764  ;;  %v752_v18 = vsel %vm601_vm4, %v2581_v21, %v4482_v33  ;;  %v4148_v42 = vpack.c.b16 %v2167_v58, %v2167_v58 }
 0x3f8   : > { %v692_v41 = vsel %vm663_vm5, %v2576_v3, %v4484_v44  ;;  %v2556_v3 = vunpack.i.l.bf16 %v4487_v50  ;;  %v1803_v44 = vsel %vm601_vm4, %v2761_v13, %v2726_v46  ;;  %v2766_v46 = vunpack.i.l.bf16 %v4106_v17 }
 0x3f9   : > { %2192 = vmatpush.bf16.msrb.mxu0 %v4477_v1  ;;  %2222 = vmatpush.bf16.msrb.mxu2 %v4478_v43  ;;  %v2112_v21 = vpack.c.bf16 %v752_v18, %v692_v41  ;;  %v4486_v43 = vunpack.i.h.bf16 %v4481_v29 }
 0x3fb   : > { %v569_v27 = vsel %vm568_vm7, %v2566_v20, %v4486_v43  ;;  %v4489_v20 = vunpack.i.h.bf16 %v4485_v5 }
 0x3fc   : > { %2223 = vmatmul.bf16.vlgmr.msrb.gmra.mxu2 %v4148_v42 }
 0x3fd   : > { %2193 = vmatpush.bf16.msrb.mxu0 %v2116_v39  ;;  %v4488_v39 = vunpack.i.h.bf16 %v4483_v40  ;;  %v507_v58 = vsel %vm506_vm8, %v2561_v25, %v4489_v20 }
 0x3ff   : > { %v4139_v22 = vpop.permute.xlu0 %2754  ;;  %v4141_v16 = vpop.permute.xlu2 %2779  ;;  %v631_v33 = vsel %vm630_vm6, %v2571_v24, %v4488_v39  ;;  %v4490_v24 = vunpack.i.h.bf16 %v4487_v50 }
 0x400   : > { %v2756_v1 = vunpack.i.l.bf16 %v4139_v22  ;;  %v2108_v29 = vpack.c.bf16 %v631_v33, %v569_v27  ;;  %v2781_v40 = vunpack.i.l.bf16 %v4141_v16  ;;  %v2782_v55 = vunpack.i.h.bf16 %v4141_v16 }
 0x401   : > { %2194 = vmatpush.bf16.msrb.mxu0 %v2112_v21  ;;  %v2767_v21 = vunpack.i.h.bf16 %v4106_v17 }
 0x402   : > { %v1743_v18 = vsel %vm663_vm5, %v2756_v1, %v2721_v8  ;;  %v445_v8 = vsel %vm444_vm9, %v2556_v3, %v4490_v24  ;;  %v1683_v3 = vsel %vm630_vm6, %v2781_v40, %v2751_v56  ;;  %v2697_v24 = vunpack.i.h.bf16 %v3996_v51 }
 0x403   : > { %v2148_v41 = vpack.c.bf16 %v1803_v44, %v1743_v18  ;;  %v2104_v43 = vpack.c.bf16 %v507_v58, %v445_v8  ;;  %v1504_v18 = vsel %vm444_vm9, %v2766_v46, %v2767_v21  ;;  %v1685_v60 = vsel %vm630_vm6, %v2752_v9, %v2782_v55 }
 0x405   : > { %2195 = vmatpush.bf16.msrb.mxu0 %v2108_v29  ;;  %2206 = vmatpush.bf16.msrb.mxu1 %v2148_v41 }
 0x407   : > { %v4170_v13 = vpop.permute.xlu2 %2784  ;;  %v4172_v1 = vpop.permute.xlu1 %2774 }
 0x408   : > { %v4174_v5 = vpop.permute.xlu0 %2769  ;;  %v2776_v25 = vunpack.i.l.bf16 %v4172_v1 }
 0x409   : > { %v2772_v27 = vunpack.i.h.bf16 %v4174_v5  ;;  %v2771_v39 = vunpack.i.l.bf16 %v4174_v5  ;;  %2196 = vmatpush.bf16.msrb.mxu0 %v2104_v43  ;;  %v2787_v43 = vunpack.i.h.bf16 %v4170_v13 }
 0x40a   : > { %v1623_v50 = vsel %vm568_vm7, %v2776_v25, %v2746_v38  ;;  %v2786_v25 = vunpack.i.l.bf16 %v4170_v13 }
 0x40b   : > { %v2144_v33 = vpack.c.bf16 %v1683_v3, %v1623_v50  ;;  %v1564_v44 = vsel %vm506_vm8, %v2771_v39, %v2772_v27 }
 0x40c   : > { %v2141_v29 = vpack.c.bf16 %v1564_v44, %v1504_v18  ;;  %2197 = vmatmul.bf16.vlgmr.msrb.gmra.mxu0 %v4148_v42  ;;  %v2168_v18 = vunpack.c.h.b16 %v4131_v35  ;;  %v2737_v44 = vunpack.i.h.bf16 %v4037_v36  ;;  %v2732_v35 = vunpack.i.h.bf16 %v4030_v53 }
 0x40d   : > { %2207 = vmatpush.bf16.msrb.mxu1 %v2144_v33  ;;  %v4503_v36 = vpack.c.bf16 %v4097_v10, %v3544_v2  ;;  %v4511_v2 = vld [vmem:[#allocation17_spill] sm:$0xff] }
 0x40e   : > { %2234 = vmatpush.bf16.msrb.mxu3 %v2141_v29  ;;  %v4226_v6 = vpack.c.b16 %v2168_v18, %v2168_v18 }
 0x40f   : > { %v4192_v41 = vpop.permute.xlu2 %2799  ;;  %v1322_v38 = vpop.permute.xlu1 %1321 }
 0x410   : > { %v1262_v20 = vpop.permute.xlu0 %1261  ;;  %v1326_v56 = vsel %vm1088_vm14, %v2692_v28, %v1322_v38  ;;  %v2801_v8 = vunpack.i.l.bf16 %v4192_v41  ;;  %v1985_v28 = vsel %vm415_vm1, %v4491_v7, %v2697_v24  ;;  %vm2172_vm14 = vcmask 719872  }
 0x411   : > { %v1266_v58 = vsel %vm1150_vm10, %v2687_v19, %v1262_v20  ;;  %v2158_v20 = vpack.c.bf16 %v1985_v28, %v1985_v28  ;;  %vm4492_vm10 = vcmask 982016  }
 0x412   : > { %v2135_v40 = vpack.c.bf16 %v1326_v56, %v1266_v58  ;;  %v1563_v38 = vsel %vm506_vm8, %v2801_v8, %v2771_v39  ;;  %v1384_v56 = vsel %vm4492_vm10, %v2786_v25, %v2787_v43  ;;  %v1925_v8 = vsel %vm477_vm2, %v2707_v61, %v2737_v44 }
 0x413   : > { %v2184_v39 = vsel %vm2176_vm12, %v2158_v20, 0 }
 0x414   : > { %2267 = vmatpush.bf16.msra.mxu0 %v2135_v40  ;;  %v1202_v40 = vperm.slane %v3892_v49, 3 }
 0x416   : > { %v1210_v53 = vmul.f32 %v1202_v40, %v3036_v52  ;;  %v2777_v52 = vunpack.i.h.bf16 %v4172_v1  ;;  %v2802_v1 = vunpack.i.h.bf16 %v4192_v41  ;;  %v2160_v41 = vld [vmem:[%s4388_s5] sm:$0xff] }
 0x417   : > { %v1374_v50 = vpop.permute.xlu2 %1373  ;;  %v4204_v3 = vpop.permute.xlu1 %2794  ;;  %2163 = vperm.xlu2 %2803, %v2160_v41  }
 0x418   : > { %v4209_v62 = vpop.permute.xlu0 %2789  ;;  %v2796_v19 = vunpack.i.l.bf16 %v4204_v3  ;;  %v1625_v11 = vsel %vm568_vm7, %v2747_v4, %v2777_v52  ;;  %v1565_v57 = vsel %vm506_vm8, %v2772_v27, %v2802_v1  ;;  %v4500_v27 = vld [vmem:[#allocation20_spill] sm:$0xff] }
 0x419   : > { %v2792_v51 = vunpack.i.h.bf16 %v4209_v62  ;;  %v2791_v33 = vunpack.i.l.bf16 %v4209_v62 }
 0x41a   : > { %v1503_v29 = vsel %vm444_vm9, %v2796_v19, %v2766_v46  ;;  %v2757_v46 = vunpack.i.h.bf16 %v4139_v22  ;;  %v2762_v19 = vunpack.i.h.bf16 %v4122_v34 }
 0x41b   : > { %v2140_v45 = vpack.c.bf16 %v1563_v38, %v1503_v29  ;;  %v1444_v58 = vsel %vm4493_vm11, %v2791_v33, %v2792_v51  ;;  %v1865_v29 = vsel %vm539_vm3, %v2702_v54, %v2732_v35 }
 0x41c   : > { %v2137_v7 = vpack.c.bf16 %v1444_v58, %v1384_v56  ;;  %v2154_v61 = vpack.c.bf16 %v1925_v8, %v1865_v29  ;;  %v1745_v31 = vsel %vm663_vm5, %v2722_v37, %v2757_v46  ;;  %v4496_v56 = vld [vmem:[#allocation29_spill] sm:$0xff]  ;;  %v2146_v58 = vpack.c.bf16 %v1685_v60, %v1625_v11  ;;  %v4510_v29 = vld [vmem:[#allocation18_spill] sm:$0xff]  ;;  %v4521_v60 = vld [vmem:[#allocation11_spill] sm:$0xff] }
 0x41d   : > { %2208 = vmatpush.bf16.msrb.mxu1 %v2140_v45  ;;  %v4512_v10 = vpack.c.bf16 %v4510_v29, %v4511_v2 }
 0x41e   : > { %2235 = vmatpush.bf16.msrb.mxu3 %v2137_v7  ;;  %v4501_v7 = vld [vmem:[#allocation23_spill] sm:$0xff] }
 0x41f   : > { %v1862_v49 = vpop.permute.xlu2 %1861  ;;  %v1178_v28 = vpop.permute.xlu1 %1177 }
 0x420   : > { %v1982_v18 = vpop.permute.xlu0 %1981  ;;  %v1183_v22 = vsel %vm1179_vm15, %v2717_v12, %v1178_v28  ;;  %v1805_v12 = vsel %vm601_vm4, %v2727_v30, %v2762_v19  ;;  %vm4495_vm15 = vmmov %vm4493_vm11  ;;  %v4507_v28 = vld [vmem:[#allocation28_spill] sm:$0xff] }
 0x421   : > { %v1986_v32 = vsel %vm415_vm1, %v2697_v24, %v1982_v18  ;;  %v2131_v38 = vpack.c.bf16 %v1210_v53, %v1183_v22  ;;  %2510 = vmatmul.msk.bf16.vlgmr.msrb.gmra.mxu3 %vm2172_vm14, %v4226_v6  ;;  %v2150_v34 = vpack.c.bf16 %v1805_v12, %v1745_v31  ;;  %v2797_v24 = vunpack.i.h.bf16 %v4204_v3  ;;  %vm4494_vm1 = vmmov %vm4492_vm10  ;;  %v4508_v18 = vld [vmem:[#allocation25_spill] sm:$0xff]  ;;  %v4516_v12 = vld [vmem:[#allocation10_spill] sm:$0xff] }
 0x422   : > { %2256 = vmatpush.bf16.msra.mxu3 %v2184_v39  ;;  %v2159_v20 = vpack.c.bf16 %v1986_v32, %v1986_v32  ;;  %v1383_v30 = vsel %vm4494_vm1, %v1374_v50, %v2786_v25  ;;  %v4498_v25 = vld [vmem:[#allocation26_spill] sm:$0xff]  ;;  %v4502_v39 = vpack.c.bf16 %v4500_v27, %v4501_v7  ;;  %v4509_v22 = vpack.c.bf16 %v4507_v28, %v4508_v18 }
 0x423   : > { %2268 = vmatpush.bf16.msra.mxu0 %v2131_v38  ;;  %v1505_v47 = vsel %vm444_vm9, %v2767_v21, %v2797_v24  ;;  %v4497_v21 = vld [vmem:[#allocation27_spill] sm:$0xff]  ;;  %v4513_v38 = vld [vmem:[#allocation21_spill] sm:$0xff] }
 0x424   : > { %v2187_v54 = vsel %vm2176_vm12, %v2159_v20, 0  ;;  %v4499_v50 = vpack.c.bf16 %v4497_v21, %v4498_v25 }
 0x425   : > { %2282 = vmatpush.bf16.msra.mxu2 %v2187_v54 }
 0x426   : > { %2257 = vmatpush.bf16.msra.mxu3 %v2154_v61  ;;  %v4514_v61 = vld [vmem:[#allocation24_spill] sm:$0xff] }
 0x427   : > { %v1116_v37 = vpop.permute.xlu1 %1115  ;;  %v1802_v59 = vpop.permute.xlu2 %1801  ;;  %v4515_v20 = vpack.c.bf16 %v4513_v38, %v4514_v61 }
 0x428   : > { %v1434_v45 = vpop.permute.xlu0 %1433  ;;  %v1121_v16 = vsel %vm1117_vm0, %v2742_v48, %v1116_v37  ;;  %v2142_v48 = vpack.c.bf16 %v1565_v57, %v1505_v47  ;;  %v1806_v8 = vsel %vm601_vm4, %v2762_v19, %v1802_v59  ;;  %v4525_v59 = vld [vmem:[#allocation7_spill] sm:$0xff] }
 0x429   : > { %v1443_v3 = vsel %vm4495_vm15, %v1434_v45, %v2791_v33  ;;  %v2127_v4 = vpack.c.bf16 %v1121_v16, %v4496_v56  ;;  %v1866_v33 = vsel %vm539_vm3, %v2732_v35, %v1862_v49  ;;  %vm4520_vm3 = vmmov %vm4493_vm11 }
 0x42a   : > { %2258 = vmatpush.bf16.msra.mxu3 %v2150_v34  ;;  %v2136_v40 = vpack.c.bf16 %v1443_v3, %v1383_v30  ;;  %v4517_v34 = vld [vmem:[#allocation13_spill] sm:$0xff]  ;;  %v4522_v30 = vld [vmem:[#allocation16_spill] sm:$0xff]  ;;  %vm4527_vm4 = vmmov %vm4520_vm3 }
 0x42b   : > { %2269 = vmatpush.bf16.msra.mxu0 %v2127_v4  ;;  %v4518_v11 = vpack.c.bf16 %v4516_v12, %v4517_v34  ;;  %v4523_v3 = vpack.c.bf16 %v4521_v60, %v4522_v30  ;;  %v4529_v4 = vld [vmem:[#allocation12_spill] sm:$0xff] }
 0x42c   : > { %2209 = vmatpush.bf16.msrb.mxu1 %v2136_v40 }
 0x42e   : > { %2259 = vmatpush.bf16.msra.mxu3 %v2146_v58  ;;  %v4530_v58 = vld [vmem:[#allocation14_spill] sm:$0xff] }
 0x42f   : > { %2509 = vmatmul.msk.bf16.vlgmr.msrb.gmra.mxu1 %vm2172_vm14, %v4226_v6  ;;  %v1742_v9 = vpop.permute.xlu1 %1741  ;;  %2270 = vmatpush.bf16.msra.mxu0 %v4499_v50  ;;  %v1380_v63 = vpop.permute.xlu2 %1379  ;;  %v4531_v41 = vpack.c.bf16 %v4529_v4, %v4530_v58 }
 0x430   : > { %2241 = vmatpush.bf16.msra.mxu1 %v2134_v23  ;;  %v1922_v17 = vpop.permute.xlu0 %1921  ;;  %v1746_v23 = vsel %vm663_vm5, %v2757_v46, %v1742_v9  ;;  %vm4528_vm5 = vmmov %vm4494_vm1 }
 0x431   : > { %v1926_v5 = vsel %vm477_vm2, %v2737_v44, %v1922_v17  ;;  %v2151_v44 = vpack.c.bf16 %v1806_v8, %v1746_v23  ;;  %vm4519_vm2 = vmmov %vm4494_vm1 }
 0x432   : > { %2260 = vmatpush.bf16.msra.mxu3 %v2142_v48  ;;  %v2155_v26 = vpack.c.bf16 %v1926_v5, %v1866_v33  ;;  %v1385_v37 = vsel %vm4519_vm2, %v2787_v43, %v1380_v63 }
 0x433   : > { %2271 = vmatpush.bf16.msra.mxu0 %v4502_v39 }
 0x434   : > { %2242 = vmatpush.bf16.msra.mxu1 %v2130_v14  ;;  %2283 = vmatpush.bf16.msra.mxu2 %v2155_v26  ;;  %v4505_v14 = vld [vmem:[#allocation15_spill] sm:$0xff] }
 0x435   : > { %v4506_v53 = vpack.c.bf16 %v4504_v15, %v4505_v14 }
 0x437   : > { %v1682_v35 = vpop.permute.xlu1 %1681  ;;  %2272 = vmatpush.bf16.msra.mxu0 %v4506_v53  ;;  %v1562_v32 = vpop.permute.xlu2 %1561 }
 0x438   : > { %2243 = vmatpush.bf16.msra.mxu1 %v4503_v36  ;;  %v1622_v49 = vpop.permute.xlu0 %1621  ;;  %v1686_v0 = vsel %vm630_vm6, %v2782_v55, %v1682_v35  ;;  %2284 = vmatpush.bf16.msra.mxu2 %v2151_v44  ;;  %v1566_v55 = vsel %vm506_vm8, %v2802_v1, %v1562_v32  ;;  %v2304_v44 = vld [vmem:[%s4389_s6 + $0x8] sm:$0xff] }
 0x439   : > { %v1626_v46 = vsel %vm568_vm7, %v2777_v52, %v1622_v49  ;;  %2312 = vperm.xlu1 %2804, %v2304_v44  }
 0x43a   : > { %v2147_v19 = vpack.c.bf16 %v1686_v0, %v1626_v46 }
 0x43b   : > { %2273 = vmatpush.bf16.msra.mxu0 %v4512_v10 }
 0x43c   : > { %2244 = vmatpush.bf16.msra.mxu1 %v4509_v22  ;;  %2285 = vmatpush.bf16.msra.mxu2 %v2147_v19 }
 0x43f   : > { %v1502_v31 = vpop.permute.xlu1 %1501  ;;  %2274 = vmatpush.bf16.msra.mxu0 %v4518_v11 }
 0x440   : > { %2245 = vmatpush.bf16.msra.mxu1 %v4515_v20  ;;  %v1440_v54 = vpop.permute.xlu0 %1439  ;;  %v1506_v52 = vsel %vm444_vm9, %v2797_v24, %v1502_v31  ;;  %v4524_v24 = vld [vmem:[#allocation19_spill] sm:$0xff] }
 0x441   : > { %v1445_v45 = vsel %vm4520_vm3, %v2792_v51, %v1440_v54  ;;  %v2143_v16 = vpack.c.bf16 %v1566_v55, %v1506_v52  ;;  %v4526_v56 = vpack.c.bf16 %v4524_v24, %v4525_v59  ;;  %v2805_v52 = vld [vmem:[%s2911_s17 + $0x8] sm:$0xff] }
 0x442   : > { %v2138_v1 = vpack.c.bf16 %v1445_v45, %v1385_v37  ;;  %2275 = vmatmul.bf16.vlgmr.msra.gmra.mxu0 %v4148_v42  ;;  %v2806_v45 = vld [vmem:[%s2911_s17] sm:$0xff]  ;;  %v2807_v24 = vld [vmem:[%s2911_s17 + $0x28] sm:$0xff] }
 0x443   : > { %2286 = vmatpush.bf16.msra.mxu2 %v2143_v16 }
 0x444   : > { %2246 = vmatpush.bf16.msra.mxu1 %v4523_v3  ;;  %2261 = vmatpush.bf16.msra.mxu3 %v2138_v1 }
 0x447   : > { %2511 = vmatmul.msk.bf16.vlgmr.msra.gmra.mxu3 %vm2172_vm14, %v4226_v6  ;;  %v1442_v13 = vpop.permute.xlu1 %1441 }
 0x448   : > { %2247 = vmatpush.bf16.msra.mxu1 %v4526_v56  ;;  %v1382_v43 = vpop.permute.xlu0 %1381  ;;  %v1446_v62 = vsel %vm4527_vm4, %v1440_v54, %v1442_v13 }
 0x449   : > { %v1386_v51 = vsel %vm4528_vm5, %v1380_v63, %v1382_v43 }
 0x44a   : > { %v2139_v40 = vpack.c.bf16 %v1446_v62, %v1386_v51  ;;  %v2808_v62 = vld [vmem:[%s2911_s17 + $0x20] sm:$0xff] }
 0x44c   : > { %2248 = vmatpush.bf16.msra.mxu1 %v4531_v41  ;;  %2287 = vmatpush.bf16.msra.mxu2 %v2139_v40 }
 0x44f   : > { %2249 = vmatmul.bf16.vlgmr.msra.gmra.mxu1 %v4148_v42  ;;  %2512 = vmatmul.msk.bf16.vlgmr.msra.gmra.mxu2 %vm2172_vm14, %v4226_v6  ;;  %v2525_v42 = vld [vmem:[%s4386_s3] sm:$0xff] }
 0x450   : > { %v2308_v31 = vpop.permute.xlu0 %2307 }
 0x471   : > { %v2164_v17 = vpop.permute.xlu2 %2163 }
 0x47f   : > { %v2224_v47 = vpop.f32.mrf.mxu2 }
 0x480   : > { %v2225_v21 = vadd.f32 %v2224_v47, %v2164_v17 }
 0x487   : > { %v2226_v48 = vpop.f32.mrf.mxu2 }
 0x489   : > { %v2198_v57 = vpop.f32.mrf.mxu0 }
 0x48a   : > { %v2199_v26 = vadd.f32 %v2198_v57, %v2164_v17  ;;  %v2809_v57 = vld [vmem:[%s2911_s17 + $0x10] sm:$0xff] }
 0x491   : > { %v2200_v9 = vpop.f32.mrf.mxu0 }
 0x492   : > { %v2810_v9 = vld [vmem:[%s2911_s17 + $0x18] sm:$0xff] }
 0x4a4   : > { %v2237_v25 = vpop.f32.mrf.mxu3 }
 0x4a5   : > { %v2238_v50 = vadd.f32 %v2237_v25, %v2225_v21 }
 0x4a7   : > { %v2294_v33 = vmax.f32 %v2238_v50, 0.0 }
 0x4a9   : > { %v2300_v5 = vpack.c.bf16 %v2294_v33, %v2294_v33 }
 0x4ab   : > { %v2327_v63 = vsel %vm2176_vm12, %v2300_v5, 0  ;;  %v2313_v60 = vpop.permute.xlu1 %2312 }
 0x4ac   : > { %v2211_v23 = vpop.f32.mrf.mxu1  ;;  %2356 = vmatpush.bf16.msrb.mxu1 %v2327_v63  ;;  %v2239_v6 = vpop.f32.mrf.mxu3  ;;  %v2811_v63 = vld [vmem:[%s2911_s17 + $0x30] sm:$0xff] }
 0x4ad   : > { %v2212_v27 = vadd.f32 %v2211_v23, %v2199_v26  ;;  %v2812_v23 = vld [vmem:[%s2911_s17 + $0x38] sm:$0xff] }
 0x4af   : > { %v2293_v7 = vmax.f32 %v2212_v27, 0.0  ;;  %2518 = vmatmul.msk.bf16.vlgmr.msrb.gmra.mxu1 %vm1055_vm13, %v2525_v42 }
 0x4b1   : > { %v2299_v39 = vpack.c.bf16 %v2293_v7, %v2293_v7 }
 0x4b3   : > { %v2324_v8 = vsel %vm2176_vm12, %v2299_v39, 0 }
 0x4b4   : > { %2342 = vmatpush.bf16.msrb.mxu3 %v2324_v8  ;;  %v2213_v36 = vpop.f32.mrf.mxu1 }
 0x4b7   : > { %2517 = vmatmul.msk.bf16.vlgmr.msrb.gmra.mxu3 %vm1055_vm13, %v2525_v42 }
 0x4bf   : > { %v2276_v35 = vpop.f32.mrf.mxu0 }
 0x4c0   : > { %v2277_v18 = vadd.f32 %v2276_v35, %v2164_v17 }
 0x4c7   : > { %v2278_v49 = vpop.f32.mrf.mxu0 }
 0x4ca   : > { %v2263_v14 = vpop.f32.mrf.mxu3 }
 0x4cc   : > { %v2250_v0 = vpop.f32.mrf.mxu1 }
 0x4cd   : > { %v2251_v15 = vadd.f32 %v2250_v0, %v2164_v17 }
 0x4cf   : > { %v2264_v53 = vadd.f32 %v2263_v14, %v2251_v15 }
 0x4d1   : > { %v2295_v46 = vmax.f32 %v2264_v53, 0.0 }
 0x4d2   : > { %v2265_v19 = vpop.f32.mrf.mxu3  ;;  %v2289_v29 = vpop.f32.mrf.mxu2 }
 0x4d3   : > { %v2301_v28 = vpack.c.bf16 %v2295_v46, %v2295_v46  ;;  %v2290_v10 = vadd.f32 %v2289_v29, %v2277_v18 }
 0x4d4   : > { %v2252_v22 = vpop.f32.mrf.mxu1 }
 0x4d5   : > { %v2330_v2 = vsel %vm2176_vm12, %v2301_v28, 0  ;;  %v2296_v32 = vmax.f32 %v2290_v10, 0.0 }
 0x4d6   : > { %2370 = vmatpush.bf16.msrb.mxu2 %v2330_v2 }
 0x4d7   : > { %v2302_v38 = vpack.c.bf16 %v2296_v32, %v2296_v32 }
 0x4d9   : > { %2519 = vmatmul.msk.bf16.vlgmr.msrb.gmra.mxu2 %vm1055_vm13, %v2525_v42  ;;  %v2333_v61 = vsel %vm2176_vm12, %v2302_v38, 0 }
 0x4da   : > { %v2291_v20 = vpop.f32.mrf.mxu2  ;;  %2384 = vmatpush.bf16.msrb.mxu0 %v2333_v61 }
 0x4dd   : > { %2520 = vmatmul.msk.bf16.vlgmr.msrb.gmra.mxu0 %vm1055_vm13, %v2525_v42 }
 0x52c   : > { %v2358_v55 = vpop.f32.mrf.mxu1 }
 0x52d   : > { %v2359_v54 = vadd.f32 %v2358_v55, %v2308_v31 }
 0x52f   : > { %v2392_v12 = vadd.f32 %v2805_v52, %v2359_v54 }
 0x531   : > { %v2400_v34 = vmax.f32 %v2392_v12, 0.0 }
 0x533   : > { %2408 = vst [vmem:[%s4363_s21 + $0x8] sm:$0xff] %v2400_v34 }
 0x534   : > { %v2360_v30 = vpop.f32.mrf.mxu1 }
 0x535   : > { %v2361_v1 = vadd.f32 %v2360_v30, %v2313_v60 }
 0x537   : > { %v2396_v59 = vadd.f32 %v2807_v24, %v2361_v1 }
 0x539   : > { %v2404_v43 = vmax.f32 %v2396_v59, 0.0 }
 0x53a   : > { %v2344_v11 = vpop.f32.mrf.mxu3 }
 0x53b   : > { %v2345_v37 = vadd.f32 %v2344_v11, %v2308_v31  ;;  %2412 = vst [vmem:[%s4363_s21 + $0x28] sm:$0xff] %v2404_v43 }
 0x53d   : > { %v2391_v16 = vadd.f32 %v2806_v45, %v2345_v37 }
 0x53f   : > { %v2399_v3 = vmax.f32 %v2391_v16, 0.0 }
 0x541   : > { %2407 = vst [vmem:[%s4363_s21] sm:$0xff] %v2399_v3 }
 0x542   : > { %v2346_v56 = vpop.f32.mrf.mxu3 }
 0x543   : > { %v2347_v13 = vadd.f32 %v2346_v56, %v2313_v60 }
 0x545   : > { %v2395_v51 = vadd.f32 %v2808_v62, %v2347_v13 }
 0x547   : > { %v2403_v4 = vmax.f32 %v2395_v51, 0.0 }
 0x549   : > { %2411 = vst [vmem:[%s4363_s21 + $0x20] sm:$0xff] %v2403_v4 }
 0x55a   : > { %v2386_v40 = vpop.f32.mrf.mxu0 }
 0x55b   : > { %v2387_v47 = vadd.f32 %v2386_v40, %v2308_v31 }
 0x55c   : > { %v2372_v58 = vpop.f32.mrf.mxu2 }
 0x55d   : > { %v2373_v41 = vadd.f32 %v2372_v58, %v2308_v31  ;;  %v2394_v17 = vadd.f32 %v2810_v9, %v2387_v47 }
 0x55f   : > { %v2393_v48 = vadd.f32 %v2809_v57, %v2373_v41  ;;  %v2402_v25 = vmax.f32 %v2394_v17, 0.0 }
 0x561   : > { %v2401_v21 = vmax.f32 %v2393_v48, 0.0  ;;  %2410 = vst [vmem:[%s4363_s21 + $0x18] sm:$0xff] %v2402_v25 }
 0x562   : > { %v2388_v5 = vpop.f32.mrf.mxu0 }
 0x563   : > { %2409 = vst [vmem:[%s4363_s21 + $0x10] sm:$0xff] %v2401_v21  ;;  %v2389_v26 = vadd.f32 %v2388_v5, %v2313_v60 }
 0x564   : > { %v2374_v50 = vpop.f32.mrf.mxu2 }
 0x565   : > { %v2375_v33 = vadd.f32 %v2374_v50, %v2313_v60  ;;  %v2398_v6 = vadd.f32 %v2812_v23, %v2389_v26 }
 0x567   : > { %v2397_v42 = vadd.f32 %v2811_v63, %v2375_v33  ;;  %v2406_v7 = vmax.f32 %v2398_v6, 0.0 }
 0x569   : > { %v2405_v27 = vmax.f32 %v2397_v42, 0.0  ;;  %2414 = vst [vmem:[%s4363_s21 + $0x38] sm:$0xff] %v2406_v7 }
 0x56b   : > { %2413 = vst [vmem:[%s4363_s21 + $0x30] sm:$0xff] %v2405_v27 }
 0x56c PF: > { %s18_s27 = sadd.s32 1, %s2819_s27  }
 0x56d   : > { %p15_p4 = scmp.ge.s32.totalorder %s18_s27, 4  }
 0x56f   :  { %17 = sbr.rel (!%p15_p4) target bundleno = 1 (0x1), region = 108 }

</bundles_post_ra>
